<compile_context>
chip_gen: v6e
topology: v6e:2x2x1
jax: 0.10.0
libtpu: 0.0.40
codegen_flags: <defaults>
</compile_context>

<pallas_src>
import functools

import jax
import jax.numpy as jnp
from jax.experimental import pallas as pl
from jax.experimental.pallas import tpu as pltpu


def _discriminator_kernel(L_pad, block_b, f_max,
                          emb_ref, wconv_ref, bconv_ref, tlim_ref,
                          hww_ref, hwb_ref, linw_ref, linb_ref, out_ref):
    """One batch tile.

    emb_ref  : (block_b * L_pad, D)   bf16   embedded tokens (time-padded with zeros)
    wconv_ref: (f_max, D, C)          bf16   fused conv taps (tap k >= f is zero for filter f)
    bconv_ref: (1, C)                 f32    fused conv bias
    tlim_ref : (1, C)                 int32  valid time length (L - f + 1) per out-channel
    hww_ref  : (C, C) bf16, hwb_ref : (1, C) f32
    linw_ref : (C, num_classes) bf16, linb_ref : (1, num_classes) f32
    out_ref  : (block_b, num_classes) f32    log-probs
    """
    M = emb_ref.shape[0]                     # block_b * L_pad
    C = wconv_ref.shape[2]
    x = emb_ref[...]                         # (M, D) bf16

    # ---- Conv bank: sum of f_max shifted K=D matmuls.  out[t] = sum_k x[t+k] @ W_k.
    #      The shift is done on the f32 partials with pltpu.roll (sublane rotate, XLU slot,
    #      32-bit so no sub-word packing issues).  Rows that wrap across sequence / tile
    #      boundaries only land on positions masked out below. ----
    acc = jnp.dot(x, wconv_ref[0], preferred_element_type=jnp.float32)      # (M, C) f32
    for k in range(1, f_max):                                               # static, small
        pk = jnp.dot(x, wconv_ref[k], preferred_element_type=jnp.float32)
        acc = acc + pltpu.roll(pk, shift=M - k, axis=0)                     # row t <- row (t+k) mod M

    acc = jnp.maximum(acc + bconv_ref[...], 0.0)                            # bias + ReLU

    # ---- Valid-time mask applied ONCE to the whole tile.  ReLU output >= 0, so masking
    #      invalid (window-past-end / padded) positions to 0 leaves the max unchanged. ----
    t = jax.lax.broadcasted_iota(jnp.int32, (M, C), 0) & (L_pad - 1)        # time index per row
    acc = jnp.where(t < tlim_ref[...], acc, 0.0)

    # ---- Max-pool over time: aligned sublane regrouping (L_pad % 8 == 0) + XLU max. ----
    pred = jnp.max(acc.reshape(block_b, L_pad, C), axis=1)                  # (block_b, C) f32

    # ---- Highway layer (single affine, as in the reference module). ----
    h = (jnp.dot(pred.astype(jnp.bfloat16), hww_ref[...],
                 preferred_element_type=jnp.float32) + hwb_ref[...])
    sig = jax.nn.sigmoid(h)
    pred = sig * jnp.maximum(h, 0.0) + (1.0 - sig) * pred

    # TODO(synk): nn.Dropout(p) omitted — eval-mode identity (no RNG mask applied).

    # ---- Final linear + LogSoftmax over classes (dim=1). ----
    logits = (jnp.dot(pred.astype(jnp.bfloat16), linw_ref[...],
                      preferred_element_type=jnp.float32) + linb_ref[...])
    m = jnp.max(logits, axis=1, keepdims=True)
    z = logits - m
    out_ref[...] = z - jnp.log(jnp.sum(jnp.exp(z), axis=1, keepdims=True))


def _pick_block_b(B, L_pad, requested):
    """block_b must divide B and be 8-aligned (unless it's the whole batch); target M <= 2048."""
    def ok(bb):
        return bb > 0 and B % bb == 0 and (bb == B or bb % 8 == 0)
    if requested is not None and ok(requested):
        return requested
    if B * L_pad <= 2048:
        return B
    for bb in range(B, 0, -1):
        if ok(bb) and bb * L_pad <= 2048:
            return bb
    return B


def discriminator_forward(tokens, params, filter_sizes, num_filters, *, block_b=None):
    B, L = tokens.shape
    D = params["emb"].shape[1]
    C = sum(num_filters)
    num_classes = params["lin_w"].shape[1]
    f_max = max(filter_sizes)

    # Pad time to a power of two (>= 8): aligned sublane regrouping in-kernel and a cheap
    # `& (L_pad-1)` time-index extraction for the validity mask.
    L_pad = max(8, pl.next_power_of_2(L))
    block_b = _pick_block_b(B, L_pad, block_b)   # NOTE: on v7x pass block_b=B//2 to use both TCs

    # ---- Embedding as a real gather (bf16 table), zero-pad time, lane-dense 2-D slab. ----
    emb = jnp.take(params["emb"].astype(jnp.bfloat16), tokens, axis=0)       # (B, L, D)
    emb = jnp.pad(emb, ((0, 0), (0, L_pad - L), (0, 0)))                     # (B, L_pad, D)
    emb2d = emb.reshape(B * L_pad, D)                                        # (B*L_pad, D)

    # ---- Fuse conv weights into one (f_max, D, C) tap stack; concat biases / valid-lengths. ----
    w_blocks, b_blocks, t_lims = [], [], []
    for i, (f, nf) in enumerate(zip(filter_sizes, num_filters)):
        w = params[f"conv{i}_w"]                                             # (f, D, nf)
        w = jnp.pad(w, ((0, f_max - f), (0, 0), (0, 0)))                     # zero taps k >= f
        w_blocks.append(w)
        b_blocks.append(params[f"conv{i}_b"])                                # (1, nf)
        t_lims.append(jnp.full((1, nf), L - f + 1, jnp.int32))
    w_conv = jnp.concatenate(w_blocks, axis=2).astype(jnp.bfloat16)          # (f_max, D, C)
    b_conv = jnp.concatenate(b_blocks, axis=1)                               # (1, C) f32
    t_limit = jnp.concatenate(t_lims, axis=1)                                # (1, C) int32

    hw_w = params["hw_w"].astype(jnp.bfloat16)
    lin_w = params["lin_w"].astype(jnp.bfloat16)

    kernel = functools.partial(_discriminator_kernel, L_pad, block_b, f_max)
    grid = (B // block_b,)

    return pl.pallas_call(
        kernel,
        out_shape=jax.ShapeDtypeStruct((B, num_classes), jnp.float32),
        grid=grid,
        in_specs=[
            pl.BlockSpec((block_b * L_pad, D), lambda g: (g, 0)),            # activations (pipelined)
            pl.BlockSpec((f_max, D, C), lambda g: (0, 0, 0)),                # fused conv W (resident)
            pl.BlockSpec((1, C), lambda g: (0, 0)),                          # conv bias
            pl.BlockSpec((1, C), lambda g: (0, 0)),                          # valid lengths
            pl.BlockSpec((C, C), lambda g: (0, 0)),                          # highway W
            pl.BlockSpec((1, C), lambda g: (0, 0)),                          # highway b
            pl.BlockSpec((C, num_classes), lambda g: (0, 0)),                # linear W
            pl.BlockSpec((1, num_classes), lambda g: (0, 0)),                # linear b
        ],
        out_specs=pl.BlockSpec((block_b, num_classes), lambda g: (g, 0)),
        compiler_params=pltpu.CompilerParams(
            dimension_semantics=("parallel",),
            vmem_limit_bytes=32 * 1024 * 1024),
    )(emb2d, w_conv, b_conv, t_limit, hw_w, params["hw_b"], lin_w, params["lin_b"])


def init_params(key, vocab_size, emb_dim, filter_sizes, num_filters, num_classes):
    """Deterministic uniform(-0.05, 0.05) init, mirroring Discriminator.init_parameters()."""
    total_filters = sum(num_filters)
    n_keys = 1 + 2 * len(filter_sizes) + 4
    keys = list(jax.random.split(key, n_keys))

    def u(k, shape):
        return jax.random.uniform(k, shape, jnp.float32, -0.05, 0.05)

    params = {"emb": u(keys.pop(0), (vocab_size, emb_dim))}
    for i, (f, nf) in enumerate(zip(filter_sizes, num_filters)):
        params[f"conv{i}_w"] = u(keys.pop(0), (f, emb_dim, nf))   # (kernel-row, in-feature, out-ch)
        params[f"conv{i}_b"] = u(keys.pop(0), (1, nf))
    params["hw_w"] = u(keys.pop(0), (total_filters, total_filters))
    params["hw_b"] = u(keys.pop(0), (1, total_filters))
    params["lin_w"] = u(keys.pop(0), (total_filters, num_classes))
    params["lin_b"] = u(keys.pop(0), (1, num_classes))
    return params


def discriminator_reference(tokens, params, filter_sizes, num_filters):
    """Pure-JAX f32 reference of the PyTorch forward (eval mode)."""
    emb = jnp.take(params["emb"], tokens, axis=0)                 # (B, L, D)
    B, L, _ = emb.shape
    pools = []
    for i, (f, nf) in enumerate(zip(filter_sizes, num_filters)):
        w = params[f"conv{i}_w"]                                  # (f, D, nf)
        T = L - f + 1
        conv = jnp.zeros((B, T, nf), jnp.float32)
        for k in range(f):
            conv = conv + jnp.einsum("btd,dn->btn", emb[:, k:k + T, :], w[k])
        conv = jax.nn.relu(conv + params[f"conv{i}_b"])
        pools.append(jnp.max(conv, axis=1))                       # (B, nf)
    pred = jnp.concatenate(pools, axis=1)
    h = pred @ params["hw_w"] + params["hw_b"]
    sig = jax.nn.sigmoid(h)
    pred = sig * jax.nn.relu(h) + (1.0 - sig) * pred
    logits = pred @ params["lin_w"] + params["lin_b"]
    return jax.nn.log_softmax(logits, axis=1)


if __name__ == "__main__":
    # Small shapes consistent with the module (docstring: batch 16, seq 20, vocab 5000, emb 64).
    batch, seq_len = 16, 20
    vocab_size, emb_dim = 5000, 64
    filter_sizes = [1, 2, 3, 4]
    num_filters = [32, 32, 32, 32]       # sum = 128 -> lane-dense fused conv output
    num_classes = 2

    root = jax.random.PRNGKey(0)
    k_tok, k_param = jax.random.split(root)

    tokens = jax.random.randint(k_tok, (batch, seq_len), 0, vocab_size, dtype=jnp.int32)
    params = init_params(k_param, vocab_size, emb_dim, filter_sizes, num_filters, num_classes)

    out = discriminator_forward(tokens, params, filter_sizes, num_filters)
    out = jax.block_until_ready(out)

    assert out.shape == (batch, num_classes)
    # log-softmax rows must sum to ~1 in probability space
    assert jnp.allclose(jnp.sum(jnp.exp(out), axis=1), 1.0, atol=1e-4)

    # Compare against the pure-f32 reference (kernel uses bf16 weights -> loose tolerance).
    ref = discriminator_reference(tokens, params, filter_sizes, num_filters)
    assert jnp.allclose(out, ref, atol=1e-2), float(jnp.max(jnp.abs(out - ref)))

    print("KERNEL_OK")
</pallas_src>

<mosaic_0001>
module attributes {stable_mosaic.version = 11 : i64} {
  func.func @_discriminator_kernel(%arg0: i32, %arg1: memref<512x64xbf16, #tpu.memory_space<vmem>>, %arg2: memref<4x64x128xbf16, #tpu.memory_space<vmem>>, %arg3: memref<1x128xf32, #tpu.memory_space<vmem>>, %arg4: memref<1x128xi32, #tpu.memory_space<vmem>>, %arg5: memref<128x128xbf16, #tpu.memory_space<vmem>>, %arg6: memref<1x128xf32, #tpu.memory_space<vmem>>, %arg7: memref<128x2xbf16, #tpu.memory_space<vmem>>, %arg8: memref<1x2xf32, #tpu.memory_space<vmem>>, %arg9: memref<16x2xf32, #tpu.memory_space<vmem>>) attributes {dimension_semantics = [#tpu.dimension_semantics<parallel>], iteration_bounds = array<i64: 1>, scalar_prefetch = 0 : i64, scratch_operands = 0 : i64, tpu.core_type = #tpu.core_type<tc>, window_params = [{transform_indices = @transform_0, window_bounds = array<i64: 512, 64>}, {pipeline_mode = #tpu.pipeline_mode<synchronous>, transform_indices = @transform_1, window_bounds = array<i64: 4, 64, 128>}, {pipeline_mode = #tpu.pipeline_mode<synchronous>, transform_indices = @transform_2, window_bounds = array<i64: 1, 128>}, {pipeline_mode = #tpu.pipeline_mode<synchronous>, transform_indices = @transform_3, window_bounds = array<i64: 1, 128>}, {pipeline_mode = #tpu.pipeline_mode<synchronous>, transform_indices = @transform_4, window_bounds = array<i64: 128, 128>}, {pipeline_mode = #tpu.pipeline_mode<synchronous>, transform_indices = @transform_5, window_bounds = array<i64: 1, 128>}, {pipeline_mode = #tpu.pipeline_mode<synchronous>, transform_indices = @transform_6, window_bounds = array<i64: 128, 2>}, {pipeline_mode = #tpu.pipeline_mode<synchronous>, transform_indices = @transform_7, window_bounds = array<i64: 1, 2>}, {transform_indices = @transform_8, window_bounds = array<i64: 16, 2>}]} {
    %c0 = arith.constant 0 : index
    %c0_0 = arith.constant 0 : index
    %0 = vector.load %arg1[%c0, %c0_0] : memref<512x64xbf16, #tpu.memory_space<vmem>>, vector<512x64xbf16>
    %c0_1 = arith.constant 0 : index
    %c0_2 = arith.constant 0 : index
    %c0_3 = arith.constant 0 : index
    %1 = vector.load %arg2[%c0_1, %c0_2, %c0_3] : memref<4x64x128xbf16, #tpu.memory_space<vmem>>, vector<1x64x128xbf16>
    %2 = vector.shape_cast %1 : vector<1x64x128xbf16> to vector<64x128xbf16>
    %cst = arith.constant dense<0.000000e+00> : vector<512x128xf32>
    %3 = tpu.matmul %0, %2, %cst {dimension_numbers = #tpu.dot_dimension_numbers<[1], [0], [0], [1], [0, 0, 1, 1], [], []>} : vector<512x64xbf16>, vector<64x128xbf16>, vector<512x128xf32> -> vector<512x128xf32>
    %c1 = arith.constant 1 : index
    %c0_4 = arith.constant 0 : index
    %c0_5 = arith.constant 0 : index
    %4 = vector.load %arg2[%c1, %c0_4, %c0_5] : memref<4x64x128xbf16, #tpu.memory_space<vmem>>, vector<1x64x128xbf16>
    %5 = vector.shape_cast %4 : vector<1x64x128xbf16> to vector<64x128xbf16>
    %cst_6 = arith.constant dense<0.000000e+00> : vector<512x128xf32>
    %6 = tpu.matmul %0, %5, %cst_6 {dimension_numbers = #tpu.dot_dimension_numbers<[1], [0], [0], [1], [0, 0, 1, 1], [], []>} : vector<512x64xbf16>, vector<64x128xbf16>, vector<512x128xf32> -> vector<512x128xf32>
    %c511_i32 = arith.constant 511 : i32
    %7 = tpu.dynamic_rotate %6 by %c511_i32 dim 0 : vector<512x128xf32>, i32 -> vector<512x128xf32>
    %8 = arith.addf %3, %7 : vector<512x128xf32>
    %c2 = arith.constant 2 : index
    %c0_7 = arith.constant 0 : index
    %c0_8 = arith.constant 0 : index
    %9 = vector.load %arg2[%c2, %c0_7, %c0_8] : memref<4x64x128xbf16, #tpu.memory_space<vmem>>, vector<1x64x128xbf16>
    %10 = vector.shape_cast %9 : vector<1x64x128xbf16> to vector<64x128xbf16>
    %cst_9 = arith.constant dense<0.000000e+00> : vector<512x128xf32>
    %11 = tpu.matmul %0, %10, %cst_9 {dimension_numbers = #tpu.dot_dimension_numbers<[1], [0], [0], [1], [0, 0, 1, 1], [], []>} : vector<512x64xbf16>, vector<64x128xbf16>, vector<512x128xf32> -> vector<512x128xf32>
    %c510_i32 = arith.constant 510 : i32
    %12 = tpu.dynamic_rotate %11 by %c510_i32 dim 0 : vector<512x128xf32>, i32 -> vector<512x128xf32>
    %13 = arith.addf %8, %12 : vector<512x128xf32>
    %c3 = arith.constant 3 : index
    %c0_10 = arith.constant 0 : index
    %c0_11 = arith.constant 0 : index
    %14 = vector.load %arg2[%c3, %c0_10, %c0_11] : memref<4x64x128xbf16, #tpu.memory_space<vmem>>, vector<1x64x128xbf16>
    %15 = vector.shape_cast %14 : vector<1x64x128xbf16> to vector<64x128xbf16>
    %cst_12 = arith.constant dense<0.000000e+00> : vector<512x128xf32>
    %16 = tpu.matmul %0, %15, %cst_12 {dimension_numbers = #tpu.dot_dimension_numbers<[1], [0], [0], [1], [0, 0, 1, 1], [], []>} : vector<512x64xbf16>, vector<64x128xbf16>, vector<512x128xf32> -> vector<512x128xf32>
    %c509_i32 = arith.constant 509 : i32
    %17 = tpu.dynamic_rotate %16 by %c509_i32 dim 0 : vector<512x128xf32>, i32 -> vector<512x128xf32>
    %18 = arith.addf %13, %17 : vector<512x128xf32>
    %c0_13 = arith.constant 0 : index
    %c0_14 = arith.constant 0 : index
    %19 = vector.load %arg3[%c0_13, %c0_14] : memref<1x128xf32, #tpu.memory_space<vmem>>, vector<1x128xf32>
    %20 = vector.broadcast %19 : vector<1x128xf32> to vector<512x128xf32>
    %21 = arith.addf %18, %20 : vector<512x128xf32>
    %cst_15 = arith.constant 0.000000e+00 : f32
    %22 = vector.broadcast %cst_15 : f32 to vector<512x128xf32>
    %23 = arith.maximumf %21, %22 : vector<512x128xf32>
    %24 = tpu.iota {dimensions = array<i32: 0>} : vector<512x128xi32>
    %c31_i32 = arith.constant 31 : i32
    %25 = vector.broadcast %c31_i32 : i32 to vector<512x128xi32>
    %26 = arith.andi %24, %25 : vector<512x128xi32>
    %c0_16 = arith.constant 0 : index
    %c0_17 = arith.constant 0 : index
    %27 = vector.load %arg4[%c0_16, %c0_17] : memref<1x128xi32, #tpu.memory_space<vmem>>, vector<1x128xi32>
    %28 = vector.broadcast %27 : vector<1x128xi32> to vector<512x128xi32>
    %29 = arith.cmpi slt, %26, %28 : vector<512x128xi32>
    %cst_18 = arith.constant 0.000000e+00 : f32
    %30 = vector.broadcast %cst_18 : f32 to vector<512x128xf32>
    %31 = arith.select %29, %23, %30 : vector<512x128xi1>, vector<512x128xf32>
    %32 = vector.shape_cast %31 : vector<512x128xf32> to vector<16x32x128xf32>
    %cst_19 = arith.constant dense<0xFF800000> : vector<16x128xf32>
    %33 = vector.multi_reduction <maximumf>, %32, %cst_19 [1] : vector<16x32x128xf32> to vector<16x128xf32>
    %34 = arith.truncf %33 : vector<16x128xf32> to vector<16x128xbf16>
    %c0_20 = arith.constant 0 : index
    %c0_21 = arith.constant 0 : index
    %35 = vector.load %arg5[%c0_20, %c0_21] : memref<128x128xbf16, #tpu.memory_space<vmem>>, vector<128x128xbf16>
    %cst_22 = arith.constant dense<0.000000e+00> : vector<16x128xf32>
    %36 = tpu.matmul %34, %35, %cst_22 {dimension_numbers = #tpu.dot_dimension_numbers<[1], [0], [0], [1], [0, 0, 1, 1], [], []>} : vector<16x128xbf16>, vector<128x128xbf16>, vector<16x128xf32> -> vector<16x128xf32>
    %c0_23 = arith.constant 0 : index
    %c0_24 = arith.constant 0 : index
    %37 = vector.load %arg6[%c0_23, %c0_24] : memref<1x128xf32, #tpu.memory_space<vmem>>, vector<1x128xf32>
    %38 = vector.broadcast %37 : vector<1x128xf32> to vector<16x128xf32>
    %39 = arith.addf %36, %38 : vector<16x128xf32>
    %40 = arith.negf %39 : vector<16x128xf32>
    %41 = math.exp %40 : vector<16x128xf32>
    %cst_25 = arith.constant 1.000000e+00 : f32
    %42 = vector.broadcast %cst_25 : f32 to vector<16x128xf32>
    %43 = arith.addf %42, %41 : vector<16x128xf32>
    %44 = arith.divf %42, %43 : vector<16x128xf32>
    %cst_26 = arith.constant 0.000000e+00 : f32
    %45 = vector.broadcast %cst_26 : f32 to vector<16x128xf32>
    %46 = arith.maximumf %39, %45 : vector<16x128xf32>
    %47 = arith.mulf %44, %46 : vector<16x128xf32>
    %cst_27 = arith.constant 1.000000e+00 : f32
    %48 = vector.broadcast %cst_27 : f32 to vector<16x128xf32>
    %49 = arith.subf %48, %44 : vector<16x128xf32>
    %50 = arith.mulf %49, %33 : vector<16x128xf32>
    %51 = arith.addf %47, %50 : vector<16x128xf32>
    %52 = arith.truncf %51 : vector<16x128xf32> to vector<16x128xbf16>
    %c0_28 = arith.constant 0 : index
    %c0_29 = arith.constant 0 : index
    %53 = vector.load %arg7[%c0_28, %c0_29] : memref<128x2xbf16, #tpu.memory_space<vmem>>, vector<128x2xbf16>
    %cst_30 = arith.constant dense<0.000000e+00> : vector<16x2xf32>
    %54 = tpu.matmul %52, %53, %cst_30 {dimension_numbers = #tpu.dot_dimension_numbers<[1], [0], [0], [1], [0, 0, 1, 1], [], []>} : vector<16x128xbf16>, vector<128x2xbf16>, vector<16x2xf32> -> vector<16x2xf32>
    %c0_31 = arith.constant 0 : index
    %c0_32 = arith.constant 0 : index
    %55 = vector.load %arg8[%c0_31, %c0_32] : memref<1x2xf32, #tpu.memory_space<vmem>>, vector<1x2xf32>
    %56 = vector.broadcast %55 : vector<1x2xf32> to vector<16x2xf32>
    %57 = arith.addf %54, %56 : vector<16x2xf32>
    %cst_33 = arith.constant dense<0xFF800000> : vector<16xf32>
    %58 = vector.multi_reduction <maximumf>, %57, %cst_33 [1] : vector<16x2xf32> to vector<16xf32>
    %59 = vector.shape_cast %58 : vector<16xf32> to vector<16x1xf32>
    %60 = vector.broadcast %59 : vector<16x1xf32> to vector<16x2xf32>
    %61 = arith.subf %57, %60 : vector<16x2xf32>
    %62 = math.exp %61 : vector<16x2xf32>
    %cst_34 = arith.constant dense<0.000000e+00> : vector<16xf32>
    %63 = vector.multi_reduction <add>, %62, %cst_34 [1] : vector<16x2xf32> to vector<16xf32>
    %64 = vector.shape_cast %63 : vector<16xf32> to vector<16x1xf32>
    %65 = math.log %64 : vector<16x1xf32>
    %66 = vector.broadcast %65 : vector<16x1xf32> to vector<16x2xf32>
    %67 = arith.subf %61, %66 : vector<16x2xf32>
    %c0_35 = arith.constant 0 : index
    %c0_36 = arith.constant 0 : index
    %68 = vector.load %arg9[%c0_35, %c0_36] : memref<16x2xf32, #tpu.memory_space<vmem>>, vector<16x2xf32>
    tpu.vector_store %arg9[%c0_35, %c0_36], %67 {strides = array<i32>} : memref<16x2xf32, #tpu.memory_space<vmem>>, vector<16x2xf32>,
    return
  }
  func.func @transform_0(%arg0: i32) -> (i32, i32) {
    %c0_i32 = arith.constant 0 : i32
    %c0_i32_0 = arith.constant 0 : i32
    return %arg0, %c0_i32 : i32, i32
  }
  func.func @transform_1(%arg0: i32) -> (i32, i32, i32) {
    %c0_i32 = arith.constant 0 : i32
    %c0_i32_0 = arith.constant 0 : i32
    %c0_i32_1 = arith.constant 0 : i32
    %c0_i32_2 = arith.constant 0 : i32
    return %c0_i32, %c0_i32_0, %c0_i32_1 : i32, i32, i32
  }
  func.func @transform_2(%arg0: i32) -> (i32, i32) {
    %c0_i32 = arith.constant 0 : i32
    %c0_i32_0 = arith.constant 0 : i32
    %c0_i32_1 = arith.constant 0 : i32
    return %c0_i32, %c0_i32_0 : i32, i32
  }
  func.func @transform_3(%arg0: i32) -> (i32, i32) {
    %c0_i32 = arith.constant 0 : i32
    %c0_i32_0 = arith.constant 0 : i32
    %c0_i32_1 = arith.constant 0 : i32
    return %c0_i32, %c0_i32_0 : i32, i32
  }
  func.func @transform_4(%arg0: i32) -> (i32, i32) {
    %c0_i32 = arith.constant 0 : i32
    %c0_i32_0 = arith.constant 0 : i32
    %c0_i32_1 = arith.constant 0 : i32
    return %c0_i32, %c0_i32_0 : i32, i32
  }
  func.func @transform_5(%arg0: i32) -> (i32, i32) {
    %c0_i32 = arith.constant 0 : i32
    %c0_i32_0 = arith.constant 0 : i32
    %c0_i32_1 = arith.constant 0 : i32
    return %c0_i32, %c0_i32_0 : i32, i32
  }
  func.func @transform_6(%arg0: i32) -> (i32, i32) {
    %c0_i32 = arith.constant 0 : i32
    %c0_i32_0 = arith.constant 0 : i32
    %c0_i32_1 = arith.constant 0 : i32
    return %c0_i32, %c0_i32_0 : i32, i32
  }
  func.func @transform_7(%arg0: i32) -> (i32, i32) {
    %c0_i32 = arith.constant 0 : i32
    %c0_i32_0 = arith.constant 0 : i32
    %c0_i32_1 = arith.constant 0 : i32
    return %c0_i32, %c0_i32_0 : i32, i32
  }
  func.func @transform_8(%arg0: i32) -> (i32, i32) {
    %c0_i32 = arith.constant 0 : i32
    %c0_i32_0 = arith.constant 0 : i32
    return %arg0, %c0_i32 : i32, i32
  }
}

</mosaic_0001>

<bundles_post_ra>
// kernel: tpu_custom_call.1
= control target key start
LH: loop header
LB: loop body
LE: loop exit
PB: predicated region body
PF: predicated region fallthrough
CT: control target
= control target key end

     0   :  { %vm295_vm0 = vcmask 523264   ;;  %v745_v48 = vlaneseq  ;;  %s6347_s1 = inlined_call_operand.vmem [shape: bf16[4,64,128], index: 1, kind: input, shape index: {}]   ;;  %s6348_s0 = inlined_call_operand.vmem [shape: bf16[512,64], index: 0, kind: input, shape index: {}]   ;;  %s6349_s4 = inlined_call_operand.vmem [shape: bf16[128,128], index: 4, kind: input, shape index: {}]   ;;  %s6350_s3 = inlined_call_operand.vmem [shape: s32[1,128], index: 3, kind: input, shape index: {}]   ;;  %s6351_s2 = inlined_call_operand.vmem [shape: f32[1,128], index: 2, kind: input, shape index: {}]   ;;  %s6352_s6 = inlined_call_operand.vmem [shape: bf16[128,2], index: 6, kind: input, shape index: {}]   ;;  %s6353_s5 = inlined_call_operand.vmem [shape: f32[1,128], index: 5, kind: input, shape index: {}]   ;;  %s6354_s7 = inlined_call_operand.vmem [shape: f32[1,2], index: 7, kind: input, shape index: {}]   ;;  %s6355_s8 = inlined_call_operand.vmem [shape: f32[16,2], index: 8, kind: output, shape index: {}]  }
   0x1   :  { %v3789_v0 = vld [vmem:[%s6347_s1 + $0x38] sm:$0xff]   ;;  %v3791_v2 = vld [vmem:[%s6347_s1 + $0x30] sm:$0xff]   ;;  %v3793_v4 = vld [vmem:[%s6347_s1 + $0x28] sm:$0xff]  }
   0x2   :  { %v3790_v1 = vld [vmem:[%s6347_s1 + $0x18] sm:$0xff]   ;;  %3459 = vmatprep.subr.bf16.mxu0 %v3789_v0  ;;  %v3792_v3 = vld [vmem:[%s6347_s1 + $0x10] sm:$0xff]   ;;  %v3794_v5 = vld [vmem:[%s6347_s1 + $0x8] sm:$0xff]   ;;  %v4324_v50 = vshrl.u32 %v745_v48, 7 }
   0x3   :  { %3531 = vmatprep.subr.bf16.mxu1 %v3790_v1  ;;  %3460 = vmatpush3.bf16.msra.mxu0 %v3789_v0  ;;  %v3795_v6 = vld [vmem:[%s6347_s1 + $0x20] sm:$0xff]   ;;  %v3799_v9 = vld [vmem:[%s6347_s1 + $0x58] sm:$0xff]   ;;  %v3960_v11 = vld [vmem:[%s6348_s0 + $0x8] sm:$0xff]  }
   0x4   :  { %3532 = vmatpush3.bf16.msra.mxu1 %v3790_v1  ;;  %3461 = vmatprep.subr.bf16.mxu0 %v3791_v2  ;;  %v3942_v7 = vld [vmem:[%s6348_s0] sm:$0xff]   ;;  %v3800_v10 = vld [vmem:[%s6347_s1 + $0x78] sm:$0xff]   ;;  %v3965_v12 = vld [vmem:[%s6348_s0 + $0x10] sm:$0xff]   ;;  %vm747_vm1 = vcmp.lt.s32.totalorder %v4324_v50, 7  ;;  %vm1511_vm2 = vcmp.lt.s32.totalorder %v4324_v50, 6  ;;  %vm2026_vm3 = vcmp.lt.s32.totalorder %v4324_v50, 5 }
   0x5   :  { %3533 = vmatprep.subr.bf16.mxu1 %v3792_v3  ;;  %v3796_v8 = vld [vmem:[%s6347_s1] sm:$0xff]   ;;  %3467 = vmatprep.mubr.msk.bf16.mxu0 %vm295_vm0, %v3942_v7  ;;  %v3809_v13 = vld [vmem:[%s6347_s1 + $0x50] sm:$0xff]   ;;  %v3984_v15 = vld [vmem:[%s6348_s0 + $0x18] sm:$0xff]  }
   0x6   :  { %3539 = vmatprep.mubr.msk.bf16.mxu1 %vm295_vm0, %v3942_v7  ;;  %v3810_v14 = vld [vmem:[%s6347_s1 + $0x70] sm:$0xff]   ;;  %v3989_v16 = vld [vmem:[%s6348_s0 + $0x20] sm:$0xff]   ;;  %v4002_v17 = vld [vmem:[%s6348_s0 + $0x28] sm:$0xff]  }
   0x7   :  { %3462 = vmatpush3.bf16.msra.mxu0 %v3791_v2  ;;  %v4007_v18 = vld [vmem:[%s6348_s0 + $0x30] sm:$0xff]   ;;  %v3819_v19 = vld [vmem:[%s6347_s1 + $0x48] sm:$0xff]   ;;  %v4026_v21 = vld [vmem:[%s6348_s0 + $0x38] sm:$0xff]  }
   0x8   :  { %3534 = vmatpush3.bf16.msra.mxu1 %v3792_v3  ;;  %3463 = vmatprep.subr.bf16.mxu0 %v3793_v4  ;;  %v3820_v20 = vld [vmem:[%s6347_s1 + $0x68] sm:$0xff]   ;;  %v4031_v22 = vld [vmem:[%s6348_s0 + $0x40] sm:$0xff]   ;;  %v4055_v26 = vld [vmem:[%s6348_s0 + $0x50] sm:$0xff]  }
   0x9   :  { %3535 = vmatprep.subr.bf16.mxu1 %v3794_v5  ;;  %v3829_v23 = vld [vmem:[%s6347_s1 + $0x40] sm:$0xff]   ;;  %v4050_v25 = vld [vmem:[%s6348_s0 + $0x48] sm:$0xff]   ;;  %v4068_v27 = vld [vmem:[%s6348_s0 + $0x58] sm:$0xff]  }
   0xa   :  { %v3830_v24 = vld [vmem:[%s6347_s1 + $0x60] sm:$0xff]   ;;  %v4086_v29 = vld [vmem:[%s6348_s0 + $0x68] sm:$0xff]   ;;  %v4091_v30 = vld [vmem:[%s6348_s0 + $0x70] sm:$0xff]  }
   0xb   :  { %3464 = vmatpush3.bf16.msra.mxu0 %v3793_v4  ;;  %v4073_v28 = vld [vmem:[%s6348_s0 + $0x60] sm:$0xff]   ;;  %v4104_v31 = vld [vmem:[%s6348_s0 + $0x78] sm:$0xff]   ;;  %v4122_v33 = vld [vmem:[%s6348_s0 + $0x88] sm:$0xff]  }
   0xc   :  { %3536 = vmatpush3.bf16.msra.mxu1 %v3794_v5  ;;  %3465 = vmatprep.subr.bf16.mxu0 %v3795_v6  ;;  %v4109_v32 = vld [vmem:[%s6348_s0 + $0x80] sm:$0xff]   ;;  %v4127_v34 = vld [vmem:[%s6348_s0 + $0x90] sm:$0xff]   ;;  %v4140_v35 = vld [vmem:[%s6348_s0 + $0x98] sm:$0xff]  }
   0xd   :  { %3537 = vmatprep.subr.bf16.mxu1 %v3796_v8  ;;  %v4145_v36 = vld [vmem:[%s6348_s0 + $0xa0] sm:$0xff]   ;;  %v4158_v37 = vld [vmem:[%s6348_s0 + $0xa8] sm:$0xff]   ;;  %v4163_v38 = vld [vmem:[%s6348_s0 + $0xb0] sm:$0xff]  }
   0xe   :  { %v4176_v39 = vld [vmem:[%s6348_s0 + $0xb8] sm:$0xff]   ;;  %v4181_v40 = vld [vmem:[%s6348_s0 + $0xc0] sm:$0xff]   ;;  %v4194_v41 = vld [vmem:[%s6348_s0 + $0xc8] sm:$0xff]  }
   0xf   :  { %3466 = vmatpush3.bf16.msra.mxu0 %v3795_v6  ;;  %v4199_v42 = vld [vmem:[%s6348_s0 + $0xd0] sm:$0xff]   ;;  %v4212_v43 = vld [vmem:[%s6348_s0 + $0xd8] sm:$0xff]   ;;  %v4217_v44 = vld [vmem:[%s6348_s0 + $0xe0] sm:$0xff]  }
  0x10   :  { %3538 = vmatpush3.bf16.msra.mxu1 %v3796_v8  ;;  %3603 = vmatprep.subr.bf16.mxu0 %v3799_v9  ;;  %v4230_v45 = vld [vmem:[%s6348_s0 + $0xe8] sm:$0xff]   ;;  %v4235_v46 = vld [vmem:[%s6348_s0 + $0xf0] sm:$0xff]   ;;  %v4248_v47 = vld [vmem:[%s6348_s0 + $0xf8] sm:$0xff]  }
  0x11   :  { %3675 = vmatprep.subr.bf16.mxu1 %v3800_v10 }
  0x12   :  { %3468 = vmatmul.mubr.msk.bf16.vlgmr.msra.gmra.mxu0 %vm295_vm0, %v3960_v11 }
  0x13   :  { %3540 = vmatmul.mubr.msk.bf16.vlgmr.msra.gmra.mxu1 %vm295_vm0, %v3960_v11  ;;  %3604 = vmatpush3.bf16.msra.mxu0 %v3799_v9 }
  0x14   :  { %3676 = vmatpush3.bf16.msra.mxu1 %v3800_v10  ;;  %3471 = vmatprep.mubr.msk.bf16.mxu0 %vm295_vm0, %v3965_v12 }
  0x15   :  { %3543 = vmatprep.mubr.msk.bf16.mxu1 %vm295_vm0, %v3965_v12  ;;  %3605 = vmatprep.subr.bf16.mxu0 %v3809_v13 }
  0x16   :  { %3677 = vmatprep.subr.bf16.mxu1 %v3810_v14 }
  0x17   :  { %3606 = vmatpush3.bf16.msra.mxu0 %v3809_v13 }
  0x18   :  { %3678 = vmatpush3.bf16.msra.mxu1 %v3810_v14  ;;  %3607 = vmatprep.subr.bf16.mxu0 %v3819_v19 }
  0x19   :  { %3679 = vmatprep.subr.bf16.mxu1 %v3820_v20 }
  0x1a   :  { %3472 = vmatmul.mubr.msk.bf16.gmra.mxu0 %vm295_vm0, %v3984_v15 }
  0x1b   :  { %3544 = vmatmul.mubr.msk.bf16.gmra.mxu1 %vm295_vm0, %v3984_v15  ;;  %3475 = vmatprep.mubr.msk.bf16.mxu0 %vm295_vm0, %v3989_v16 }
  0x1c   :  { %3547 = vmatprep.mubr.msk.bf16.mxu1 %vm295_vm0, %v3989_v16  ;;  %3608 = vmatpush3.bf16.msra.mxu0 %v3819_v19 }
  0x1d   :  { %3680 = vmatpush3.bf16.msra.mxu1 %v3820_v20  ;;  %3609 = vmatprep.subr.bf16.mxu0 %v3829_v23 }
  0x1e   :  { %3681 = vmatprep.subr.bf16.mxu1 %v3830_v24 }
  0x20   :  { %3610 = vmatpush3.bf16.msra.mxu0 %v3829_v23 }
  0x21   :  { %3682 = vmatpush3.bf16.msra.mxu1 %v3830_v24 }
  0x22   :  { %3476 = vmatmul.mubr.msk.bf16.gmra.mxu0 %vm295_vm0, %v4002_v17 }
  0x23   :  { %3548 = vmatmul.mubr.msk.bf16.gmra.mxu1 %vm295_vm0, %v4002_v17  ;;  %3479 = vmatprep.mubr.msk.bf16.mxu0 %vm295_vm0, %v4007_v18 }
  0x24   :  { %3551 = vmatprep.mubr.msk.bf16.mxu1 %vm295_vm0, %v4007_v18 }
  0x2a   :  { %3480 = vmatmul.mubr.msk.bf16.gmra.mxu0 %vm295_vm0, %v4026_v21 }
  0x2b   :  { %3552 = vmatmul.mubr.msk.bf16.gmra.mxu1 %vm295_vm0, %v4026_v21  ;;  %3483 = vmatprep.mubr.msk.bf16.mxu0 %vm295_vm0, %v4031_v22 }
  0x2c   :  { %3555 = vmatprep.mubr.msk.bf16.mxu1 %vm295_vm0, %v4031_v22 }
  0x32   :  { %3484 = vmatmul.mubr.msk.bf16.gmra.mxu0 %vm295_vm0, %v4050_v25 }
  0x33   :  { %3556 = vmatmul.mubr.msk.bf16.gmra.mxu1 %vm295_vm0, %v4050_v25  ;;  %3487 = vmatprep.mubr.msk.bf16.mxu0 %vm295_vm0, %v4055_v26 }
  0x34   :  { %3559 = vmatprep.mubr.msk.bf16.mxu1 %vm295_vm0, %v4055_v26 }
  0x3a   :  { %3488 = vmatmul.mubr.msk.bf16.gmra.mxu0 %vm295_vm0, %v4068_v27 }
  0x3b   :  { %3560 = vmatmul.mubr.msk.bf16.gmra.mxu1 %vm295_vm0, %v4068_v27  ;;  %3491 = vmatprep.mubr.msk.bf16.mxu0 %vm295_vm0, %v4073_v28 }
  0x3c   :  { %3563 = vmatprep.mubr.msk.bf16.mxu1 %vm295_vm0, %v4073_v28 }
  0x42   :  { %3492 = vmatmul.mubr.msk.bf16.gmra.mxu0 %vm295_vm0, %v4086_v29 }
  0x43   :  { %3564 = vmatmul.mubr.msk.bf16.gmra.mxu1 %vm295_vm0, %v4086_v29  ;;  %3495 = vmatprep.mubr.msk.bf16.mxu0 %vm295_vm0, %v4091_v30 }
  0x44   :  { %3567 = vmatprep.mubr.msk.bf16.mxu1 %vm295_vm0, %v4091_v30 }
  0x4a   :  { %3496 = vmatmul.mubr.msk.bf16.gmra.mxu0 %vm295_vm0, %v4104_v31 }
  0x4b   :  { %3568 = vmatmul.mubr.msk.bf16.gmra.mxu1 %vm295_vm0, %v4104_v31  ;;  %3499 = vmatprep.mubr.msk.bf16.mxu0 %vm295_vm0, %v4109_v32 }
  0x4c   :  { %3571 = vmatprep.mubr.msk.bf16.mxu1 %vm295_vm0, %v4109_v32 }
  0x52   :  { %3500 = vmatmul.mubr.msk.bf16.gmra.mxu0 %vm295_vm0, %v4122_v33 }
  0x53   :  { %3572 = vmatmul.mubr.msk.bf16.gmra.mxu1 %vm295_vm0, %v4122_v33  ;;  %3503 = vmatprep.mubr.msk.bf16.mxu0 %vm295_vm0, %v4127_v34 }
  0x54   :  { %3575 = vmatprep.mubr.msk.bf16.mxu1 %vm295_vm0, %v4127_v34 }
  0x5a   :  { %3504 = vmatmul.mubr.msk.bf16.gmra.mxu0 %vm295_vm0, %v4140_v35 }
  0x5b   :  { %3576 = vmatmul.mubr.msk.bf16.gmra.mxu1 %vm295_vm0, %v4140_v35  ;;  %3507 = vmatprep.mubr.msk.bf16.mxu0 %vm295_vm0, %v4145_v36 }
  0x5c   :  { %3579 = vmatprep.mubr.msk.bf16.mxu1 %vm295_vm0, %v4145_v36 }
  0x62   :  { %3508 = vmatmul.mubr.msk.bf16.gmra.mxu0 %vm295_vm0, %v4158_v37 }
  0x63   :  { %3580 = vmatmul.mubr.msk.bf16.gmra.mxu1 %vm295_vm0, %v4158_v37  ;;  %3511 = vmatprep.mubr.msk.bf16.mxu0 %vm295_vm0, %v4163_v38 }
  0x64   :  { %3583 = vmatprep.mubr.msk.bf16.mxu1 %vm295_vm0, %v4163_v38 }
  0x6a   :  { %3512 = vmatmul.mubr.msk.bf16.gmra.mxu0 %vm295_vm0, %v4176_v39 }
  0x6b   :  { %3584 = vmatmul.mubr.msk.bf16.gmra.mxu1 %vm295_vm0, %v4176_v39  ;;  %3515 = vmatprep.mubr.msk.bf16.mxu0 %vm295_vm0, %v4181_v40 }
  0x6c   :  { %3587 = vmatprep.mubr.msk.bf16.mxu1 %vm295_vm0, %v4181_v40 }
  0x72   :  { %3516 = vmatmul.mubr.msk.bf16.gmra.mxu0 %vm295_vm0, %v4194_v41 }
  0x73   :  { %3588 = vmatmul.mubr.msk.bf16.gmra.mxu1 %vm295_vm0, %v4194_v41  ;;  %3519 = vmatprep.mubr.msk.bf16.mxu0 %vm295_vm0, %v4199_v42 }
  0x74   :  { %3591 = vmatprep.mubr.msk.bf16.mxu1 %vm295_vm0, %v4199_v42 }
  0x7a   :  { %3520 = vmatmul.mubr.msk.bf16.gmra.mxu0 %vm295_vm0, %v4212_v43 }
  0x7b   :  { %3592 = vmatmul.mubr.msk.bf16.gmra.mxu1 %vm295_vm0, %v4212_v43  ;;  %3523 = vmatprep.mubr.msk.bf16.mxu0 %vm295_vm0, %v4217_v44 }
  0x7c   :  { %3595 = vmatprep.mubr.msk.bf16.mxu1 %vm295_vm0, %v4217_v44 }
  0x82   :  { %3524 = vmatmul.mubr.msk.bf16.gmra.mxu0 %vm295_vm0, %v4230_v45 }
  0x83   :  { %3596 = vmatmul.mubr.msk.bf16.gmra.mxu1 %vm295_vm0, %v4230_v45  ;;  %3527 = vmatprep.mubr.msk.bf16.mxu0 %vm295_vm0, %v4235_v46 }
  0x84   :  { %3599 = vmatprep.mubr.msk.bf16.mxu1 %vm295_vm0, %v4235_v46 }
  0x8a   :  { %3528 = vmatmul.mubr.msk.bf16.gmra.mxu0 %vm295_vm0, %v4248_v47 }
  0x8b   :  { %3600 = vmatmul.mubr.msk.bf16.gmra.mxu1 %vm295_vm0, %v4248_v47  ;;  %3611 = vmatprep.mubr.msk.bf16.mxu0 %vm295_vm0, %v3942_v7 }
  0x8c   :  { %3683 = vmatprep.mubr.msk.bf16.mxu1 %vm295_vm0, %v3942_v7 }
  0x92   :  { %3612 = vmatmul.mubr.msk.bf16.vlgmr.msra.gmra.mxu0 %vm295_vm0, %v3960_v11 }
  0x93   :  { %3684 = vmatmul.mubr.msk.bf16.vlgmr.msra.gmra.mxu1 %vm295_vm0, %v3960_v11  ;;  %3615 = vmatprep.mubr.msk.bf16.mxu0 %vm295_vm0, %v3965_v12 }
  0x94   :  { %3687 = vmatprep.mubr.msk.bf16.mxu1 %vm295_vm0, %v3965_v12 }
  0x9a   :  { %3616 = vmatmul.mubr.msk.bf16.gmra.mxu0 %vm295_vm0, %v3984_v15 }
  0x9b   :  { %3688 = vmatmul.mubr.msk.bf16.gmra.mxu1 %vm295_vm0, %v3984_v15  ;;  %3619 = vmatprep.mubr.msk.bf16.mxu0 %vm295_vm0, %v3989_v16 }
  0x9c   :  { %3691 = vmatprep.mubr.msk.bf16.mxu1 %vm295_vm0, %v3989_v16 }
  0xa2   :  { %3620 = vmatmul.mubr.msk.bf16.gmra.mxu0 %vm295_vm0, %v4002_v17 }
  0xa3   :  { %3692 = vmatmul.mubr.msk.bf16.gmra.mxu1 %vm295_vm0, %v4002_v17  ;;  %3623 = vmatprep.mubr.msk.bf16.mxu0 %vm295_vm0, %v4007_v18 }
  0xa4   :  { %3695 = vmatprep.mubr.msk.bf16.mxu1 %vm295_vm0, %v4007_v18 }
  0xaa   :  { %3624 = vmatmul.mubr.msk.bf16.gmra.mxu0 %vm295_vm0, %v4026_v21 }
  0xab   :  { %3696 = vmatmul.mubr.msk.bf16.gmra.mxu1 %vm295_vm0, %v4026_v21  ;;  %3627 = vmatprep.mubr.msk.bf16.mxu0 %vm295_vm0, %v4031_v22 }
  0xac   :  { %3699 = vmatprep.mubr.msk.bf16.mxu1 %vm295_vm0, %v4031_v22 }
  0xb2   :  { %3628 = vmatmul.mubr.msk.bf16.gmra.mxu0 %vm295_vm0, %v4050_v25 }
  0xb3   :  { %3700 = vmatmul.mubr.msk.bf16.gmra.mxu1 %vm295_vm0, %v4050_v25  ;;  %3631 = vmatprep.mubr.msk.bf16.mxu0 %vm295_vm0, %v4055_v26 }
  0xb4   :  { %3703 = vmatprep.mubr.msk.bf16.mxu1 %vm295_vm0, %v4055_v26 }
  0xba   :  { %3632 = vmatmul.mubr.msk.bf16.gmra.mxu0 %vm295_vm0, %v4068_v27 }
  0xbb   :  { %3704 = vmatmul.mubr.msk.bf16.gmra.mxu1 %vm295_vm0, %v4068_v27  ;;  %3635 = vmatprep.mubr.msk.bf16.mxu0 %vm295_vm0, %v4073_v28 }
  0xbc   :  { %3707 = vmatprep.mubr.msk.bf16.mxu1 %vm295_vm0, %v4073_v28 }
  0xc2   :  { %3636 = vmatmul.mubr.msk.bf16.gmra.mxu0 %vm295_vm0, %v4086_v29 }
  0xc3   :  { %3708 = vmatmul.mubr.msk.bf16.gmra.mxu1 %vm295_vm0, %v4086_v29  ;;  %3639 = vmatprep.mubr.msk.bf16.mxu0 %vm295_vm0, %v4091_v30 }
  0xc4   :  { %3711 = vmatprep.mubr.msk.bf16.mxu1 %vm295_vm0, %v4091_v30 }
  0xca   :  { %3640 = vmatmul.mubr.msk.bf16.gmra.mxu0 %vm295_vm0, %v4104_v31 }
  0xcb   :  { %3712 = vmatmul.mubr.msk.bf16.gmra.mxu1 %vm295_vm0, %v4104_v31  ;;  %3643 = vmatprep.mubr.msk.bf16.mxu0 %vm295_vm0, %v4109_v32 }
  0xcc   :  { %3715 = vmatprep.mubr.msk.bf16.mxu1 %vm295_vm0, %v4109_v32 }
  0xd2   :  { %v3469_v49 = vpop.f32.mrf.mxu0  ;;  %3644 = vmatmul.mubr.msk.bf16.gmra.mxu0 %vm295_vm0, %v4122_v33 }
  0xd3   :  { %v3541_v51 = vpop.f32.mrf.mxu1  ;;  %3716 = vmatmul.mubr.msk.bf16.gmra.mxu1 %vm295_vm0, %v4122_v33  ;;  %3647 = vmatprep.mubr.msk.bf16.mxu0 %vm295_vm0, %v4127_v34  ;;  %v683_v55 = vrot.slane %v3469_v49, 1 }
  0xd4   :  { %v4330_v52 = vpop.f32.mrf.mxu0  ;;  %3719 = vmatprep.mubr.msk.bf16.mxu1 %vm295_vm0, %v4127_v34 }
  0xd5   :  { %v870_v53 = vpop.f32.mrf.mxu1  ;;  %v6356_v59 = vrot.slane %v4330_v52, 1 }
  0xd6   :  { %v3470_v54 = vpop.f32.mrf.mxu0 }
  0xd7   :  { %v684_v56 = vrot.slane %v3470_v54, 1  ;;  %v3542_v57 = vpop.f32.mrf.mxu1 }
  0xd8   :  { %v429_v58 = vpop.f32.mrf.mxu0 }
  0xd9   :  { %v808_v60 = vsel %vm747_vm1, %v683_v55, %v684_v56  ;;  %v682_v61 = vrot.slane %v429_v58, 1  ;;  %v873_v62 = vpop.f32.mrf.mxu1 }
  0xda   :  { %v4338_v63 = vadd.f32 %v3541_v51, %v808_v60  ;;  %v3473_v0 = vpop.f32.mrf.mxu0  ;;  %3648 = vmatmul.mubr.msk.bf16.gmra.mxu0 %vm295_vm0, %v4140_v35 }
  0xdb   :  { %v810_v1 = vsel %vm747_vm1, %v6356_v59, %v682_v61  ;;  %v809_v2 = vsel %vm747_vm1, %v682_v61, %v683_v55  ;;  %v3545_v3 = vpop.f32.mrf.mxu1  ;;  %3720 = vmatmul.mubr.msk.bf16.gmra.mxu1 %vm295_vm0, %v4140_v35  ;;  %3651 = vmatprep.mubr.msk.bf16.mxu0 %vm295_vm0, %v4145_v36  ;;  %v687_v10 = vrot.slane %v3473_v0, 1 }
  0xdc   :  { %v4352_v4 = vadd.f32 %v870_v53, %v810_v1  ;;  %v4354_v5 = vadd.f32 %v873_v62, %v809_v2  ;;  %v442_v6 = vpop.f32.mrf.mxu0  ;;  %3723 = vmatprep.mubr.msk.bf16.mxu1 %vm295_vm0, %v4145_v36 }
  0xdd   :  { %v685_v7 = vrot.slane %v442_v6, 1  ;;  %v886_v8 = vpop.f32.mrf.mxu1 }
  0xde   :  { %v3474_v9 = vpop.f32.mrf.mxu0 }
  0xdf   :  { %v807_v11 = vsel %vm747_vm1, %v684_v56, %v685_v7  ;;  %v688_v12 = vrot.slane %v3474_v9, 1  ;;  %v3546_v13 = vpop.f32.mrf.mxu1 }
  0xe0   :  { %v4360_v14 = vadd.f32 %v3542_v57, %v807_v11  ;;  %v445_v15 = vpop.f32.mrf.mxu0 }
  0xe1   :  { %v804_v16 = vsel %vm747_vm1, %v687_v10, %v688_v12  ;;  %v686_v17 = vrot.slane %v445_v15, 1  ;;  %v889_v18 = vpop.f32.mrf.mxu1 }
  0xe2   :  { %v4364_v19 = vadd.f32 %v3545_v3, %v804_v16  ;;  %v3477_v20 = vpop.f32.mrf.mxu0  ;;  %3652 = vmatmul.mubr.msk.bf16.gmra.mxu0 %vm295_vm0, %v4158_v37 }
  0xe3   :  { %v806_v21 = vsel %vm747_vm1, %v685_v7, %v686_v17  ;;  %v805_v22 = vsel %vm747_vm1, %v686_v17, %v687_v10  ;;  %v3549_v23 = vpop.f32.mrf.mxu1  ;;  %3724 = vmatmul.mubr.msk.bf16.gmra.mxu1 %vm295_vm0, %v4158_v37  ;;  %3655 = vmatprep.mubr.msk.bf16.mxu0 %vm295_vm0, %v4163_v38  ;;  %v691_v30 = vrot.slane %v3477_v20, 1 }
  0xe4   :  { %v4376_v24 = vadd.f32 %v886_v8, %v806_v21  ;;  %v4378_v25 = vadd.f32 %v889_v18, %v805_v22  ;;  %v458_v26 = vpop.f32.mrf.mxu0  ;;  %3727 = vmatprep.mubr.msk.bf16.mxu1 %vm295_vm0, %v4163_v38 }
  0xe5   :  { %v689_v27 = vrot.slane %v458_v26, 1  ;;  %v902_v28 = vpop.f32.mrf.mxu1 }
  0xe6   :  { %v3478_v29 = vpop.f32.mrf.mxu0 }
  0xe7   :  { %v803_v31 = vsel %vm747_vm1, %v688_v12, %v689_v27  ;;  %v692_v32 = vrot.slane %v3478_v29, 1  ;;  %v3550_v33 = vpop.f32.mrf.mxu1 }
  0xe8   :  { %v4384_v34 = vadd.f32 %v3546_v13, %v803_v31  ;;  %v461_v35 = vpop.f32.mrf.mxu0 }
  0xe9   :  { %v800_v36 = vsel %vm747_vm1, %v691_v30, %v692_v32  ;;  %v690_v37 = vrot.slane %v461_v35, 1  ;;  %v905_v48 = vpop.f32.mrf.mxu1 }
  0xea   :  { %v4388_v49 = vadd.f32 %v3549_v23, %v800_v36  ;;  %v3481_v38 = vpop.f32.mrf.mxu0  ;;  %3656 = vmatmul.mubr.msk.bf16.gmra.mxu0 %vm295_vm0, %v4176_v39 }
  0xeb   :  { %v802_v51 = vsel %vm747_vm1, %v689_v27, %v690_v37  ;;  %v801_v53 = vsel %vm747_vm1, %v690_v37, %v691_v30  ;;  %v3553_v54 = vpop.f32.mrf.mxu1  ;;  %3728 = vmatmul.mubr.msk.bf16.gmra.mxu1 %vm295_vm0, %v4176_v39  ;;  %3659 = vmatprep.mubr.msk.bf16.mxu0 %vm295_vm0, %v4181_v40  ;;  %v695_v62 = vrot.slane %v3481_v38, 1 }
  0xec   :  { %v4400_v55 = vadd.f32 %v902_v28, %v802_v51  ;;  %v4402_v56 = vadd.f32 %v905_v48, %v801_v53  ;;  %v474_v57 = vpop.f32.mrf.mxu0  ;;  %3731 = vmatprep.mubr.msk.bf16.mxu1 %vm295_vm0, %v4181_v40 }
  0xed   :  { %v693_v58 = vrot.slane %v474_v57, 1  ;;  %v918_v60 = vpop.f32.mrf.mxu1 }
  0xee   :  { %v3482_v61 = vpop.f32.mrf.mxu0 }
  0xef   :  { %v799_v0 = vsel %vm747_vm1, %v692_v32, %v693_v58  ;;  %v696_v1 = vrot.slane %v3482_v61, 1  ;;  %v3554_v39 = vpop.f32.mrf.mxu1 }
  0xf0   :  { %v4408_v2 = vadd.f32 %v3550_v33, %v799_v0  ;;  %v477_v3 = vpop.f32.mrf.mxu0 }
  0xf1   :  { %v796_v6 = vsel %vm747_vm1, %v695_v62, %v696_v1  ;;  %v694_v7 = vrot.slane %v477_v3, 1  ;;  %v921_v8 = vpop.f32.mrf.mxu1 }
  0xf2   :  { %v4412_v9 = vadd.f32 %v3553_v54, %v796_v6  ;;  %v4414_v40 = vpop.f32.mrf.mxu0  ;;  %3660 = vmatmul.mubr.msk.bf16.gmra.mxu0 %vm295_vm0, %v4194_v41 }
  0xf3   :  { %v798_v10 = vsel %vm747_vm1, %v693_v58, %v694_v7  ;;  %v797_v11 = vsel %vm747_vm1, %v694_v7, %v695_v62  ;;  %v3557_v12 = vpop.f32.mrf.mxu1  ;;  %3732 = vmatmul.mubr.msk.bf16.gmra.mxu1 %vm295_vm0, %v4194_v41  ;;  %3663 = vmatprep.mubr.msk.bf16.mxu0 %vm295_vm0, %v4199_v42  ;;  %v6358_v21 = vrot.slane %v4414_v40, 1 }
  0xf4   :  { %v4426_v13 = vadd.f32 %v918_v60, %v798_v10  ;;  %v4428_v15 = vadd.f32 %v921_v8, %v797_v11  ;;  %v490_v16 = vpop.f32.mrf.mxu0  ;;  %3735 = vmatprep.mubr.msk.bf16.mxu1 %vm295_vm0, %v4199_v42 }
  0xf5   :  { %v697_v17 = vrot.slane %v490_v16, 1  ;;  %v934_v18 = vpop.f32.mrf.mxu1 }
  0xf6   :  { %v3486_v20 = vpop.f32.mrf.mxu0 }
  0xf7   :  { %v795_v22 = vsel %vm747_vm1, %v696_v1, %v697_v17  ;;  %v700_v41 = vrot.slane %v3486_v20, 1  ;;  %v3558_v23 = vpop.f32.mrf.mxu1 }
  0xf8   :  { %v4435_v26 = vadd.f32 %v3554_v39, %v795_v22  ;;  %v4437_v27 = vpop.f32.mrf.mxu0 }
  0xf9   :  { %v792_v28 = vsel %vm747_vm1, %v6358_v21, %v700_v41  ;;  %v6357_v42 = vrot.slane %v4437_v27, 1  ;;  %v4444_v29 = vpop.f32.mrf.mxu1 }
  0xfa   :  { %v4446_v30 = vadd.f32 %v3557_v12, %v792_v28  ;;  %v3489_v31 = vpop.f32.mrf.mxu0  ;;  %3664 = vmatmul.mubr.msk.bf16.gmra.mxu0 %vm295_vm0, %v4212_v43 }
  0xfb   :  { %v794_v32 = vsel %vm747_vm1, %v697_v17, %v6357_v42  ;;  %v3561_v33 = vpop.f32.mrf.mxu1  ;;  %3736 = vmatmul.mubr.msk.bf16.gmra.mxu1 %vm295_vm0, %v4212_v43  ;;  %3667 = vmatprep.mubr.msk.bf16.mxu0 %vm295_vm0, %v4217_v44  ;;  %v703_v51 = vrot.slane %v3489_v31, 1 }
  0xfc   :  { %v4458_v35 = vadd.f32 %v934_v18, %v794_v32  ;;  %v506_v36 = vpop.f32.mrf.mxu0  ;;  %3739 = vmatprep.mubr.msk.bf16.mxu1 %vm295_vm0, %v4217_v44 }
  0xfd   :  { %v701_v37 = vrot.slane %v506_v36, 1  ;;  %v950_v48 = vpop.f32.mrf.mxu1 }
  0xfe   :  { %v3490_v38 = vpop.f32.mrf.mxu0 }
  0xff   :  { %v791_v53 = vsel %vm747_vm1, %v700_v41, %v701_v37  ;;  %v704_v54 = vrot.slane %v3490_v38, 1  ;;  %v3562_v57 = vpop.f32.mrf.mxu1 }
 0x100   :  { %v4464_v58 = vadd.f32 %v3558_v23, %v791_v53  ;;  %v509_v43 = vpop.f32.mrf.mxu0 }
 0x101   :  { %v788_v60 = vsel %vm747_vm1, %v703_v51, %v704_v54  ;;  %v702_v61 = vrot.slane %v509_v43, 1  ;;  %v953_v62 = vpop.f32.mrf.mxu1 }
 0x102   :  { %6378 = vst [vmem:[#allocation2_spill] sm:$0xff] %v4464_v58  ;;  %v4468_v0 = vadd.f32 %v3561_v33, %v788_v60  ;;  %v3493_v44 = vpop.f32.mrf.mxu0  ;;  %3668 = vmatmul.mubr.msk.bf16.gmra.mxu0 %vm295_vm0, %v4230_v45 }
 0x103   :  { %v790_v1 = vsel %vm747_vm1, %v701_v37, %v702_v61  ;;  %v789_v39 = vsel %vm747_vm1, %v702_v61, %v703_v51  ;;  %v3565_v3 = vpop.f32.mrf.mxu1  ;;  %3740 = vmatmul.mubr.msk.bf16.gmra.mxu1 %vm295_vm0, %v4230_v45  ;;  %3671 = vmatprep.mubr.msk.bf16.mxu0 %vm295_vm0, %v4235_v46  ;;  %v707_v16 = vrot.slane %v3493_v44, 1 }
 0x104   :  { %6379 = vst [vmem:[#allocation3_spill] sm:$0xff] %v4468_v0  ;;  %v4480_v6 = vadd.f32 %v950_v48, %v790_v1  ;;  %v4482_v7 = vadd.f32 %v953_v62, %v789_v39  ;;  %v522_v8 = vpop.f32.mrf.mxu0  ;;  %3743 = vmatprep.mubr.msk.bf16.mxu1 %vm295_vm0, %v4235_v46  ;;  %v4769_v0 = vadd.s32 200, %v4324_v50 }
 0x105   :  { %v705_v10 = vrot.slane %v522_v8, 1  ;;  %v966_v11 = vpop.f32.mrf.mxu1 }
 0x106   :  { %6380 = vst [vmem:[#allocation4_spill] sm:$0xff] %v4480_v6  ;;  %6381 = vst [vmem:[#allocation5_spill] sm:$0xff] %v4482_v7  ;;  %v3494_v12 = vpop.f32.mrf.mxu0  ;;  %v4766_v6 = vadd.s32 192, %v4324_v50 }
 0x107   :  { %v787_v17 = vsel %vm747_vm1, %v704_v54, %v705_v10  ;;  %v708_v18 = vrot.slane %v3494_v12, 1  ;;  %v3566_v45 = vpop.f32.mrf.mxu1  ;;  %6433 = vst [vmem:[#allocation53_spill] sm:$0xff] %v4769_v0 }
 0x108   :  { %v4488_v20 = vadd.f32 %v3562_v57, %v787_v17  ;;  %v525_v22 = vpop.f32.mrf.mxu0  ;;  %6432 = vst [vmem:[#allocation52_spill] sm:$0xff] %v4766_v6 }
 0x109   :  { %v784_v41 = vsel %vm747_vm1, %v707_v16, %v708_v18  ;;  %v706_v23 = vrot.slane %v525_v22, 1  ;;  %v969_v28 = vpop.f32.mrf.mxu1 }
 0x10a   :  { %6382 = vst [vmem:[#allocation6_spill] sm:$0xff] %v4488_v20  ;;  %v4492_v31 = vadd.f32 %v3565_v3, %v784_v41  ;;  %v3497_v46 = vpop.f32.mrf.mxu0  ;;  %3672 = vmatmul.mubr.msk.bf16.gmra.mxu0 %vm295_vm0, %v4248_v47  ;;  %v4744_v20 = vadd.s32 160, %v4324_v50 }
 0x10b   :  { %v786_v32 = vsel %vm747_vm1, %v705_v10, %v706_v23  ;;  %v785_v33 = vsel %vm747_vm1, %v706_v23, %v707_v16  ;;  %v3569_v36 = vpop.f32.mrf.mxu1  ;;  %3744 = vmatmul.mubr.msk.bf16.gmra.mxu1 %vm295_vm0, %v4248_v47  ;;  %v711_v57 = vrot.slane %v3497_v46, 1  ;;  %vm2765_vm0 = vcmask 1041409  }
 0x10c   :  { %6383 = vst [vmem:[#allocation7_spill] sm:$0xff] %v4492_v31  ;;  %v4502_v37 = vadd.f32 %v966_v11, %v786_v32  ;;  %v4504_v48 = vadd.f32 %v969_v28, %v785_v33  ;;  %v538_v38 = vpop.f32.mrf.mxu0 }
 0x10d   :  { %v709_v51 = vrot.slane %v538_v38, 1  ;;  %v982_v53 = vpop.f32.mrf.mxu1 }
 0x10e   :  { %6384 = vst [vmem:[#allocation8_spill] sm:$0xff] %v4502_v37  ;;  %6385 = vst [vmem:[#allocation9_spill] sm:$0xff] %v4504_v48  ;;  %v3498_v54 = vpop.f32.mrf.mxu0 }
 0x10f   :  { %v783_v43 = vsel %vm747_vm1, %v708_v18, %v709_v51  ;;  %v712_v60 = vrot.slane %v3498_v54, 1  ;;  %v3570_v61 = vpop.f32.mrf.mxu1 }
 0x110   :  { %v4508_v62 = vadd.f32 %v3566_v45, %v783_v43  ;;  %v541_v44 = vpop.f32.mrf.mxu0 }
 0x111   :  { %v780_v47 = vsel %vm747_vm1, %v711_v57, %v712_v60  ;;  %v710_v1 = vrot.slane %v541_v44, 1  ;;  %v985_v39 = vpop.f32.mrf.mxu1 }
 0x112   :  { %6386 = vst [vmem:[#allocation10_spill] sm:$0xff] %v4508_v62  ;;  %v4512_v3 = vadd.f32 %v3569_v36, %v780_v47  ;;  %v3501_v8 = vpop.f32.mrf.mxu0 }
 0x113   :  { %v782_v10 = vsel %vm747_vm1, %v709_v51, %v710_v1  ;;  %v781_v11 = vsel %vm747_vm1, %v710_v1, %v711_v57  ;;  %v3573_v12 = vpop.f32.mrf.mxu1  ;;  %v715_v23 = vrot.slane %v3501_v8, 1 }
 0x114   :  { %6387 = vst [vmem:[#allocation11_spill] sm:$0xff] %v4512_v3  ;;  %v4518_v16 = vadd.f32 %v982_v53, %v782_v10  ;;  %v4520_v17 = vadd.f32 %v985_v39, %v781_v11  ;;  %v554_v18 = vpop.f32.mrf.mxu0 }
 0x115   :  { %v713_v45 = vrot.slane %v554_v18, 1  ;;  %v998_v22 = vpop.f32.mrf.mxu1 }
 0x116   :  { %6388 = vst [vmem:[#allocation12_spill] sm:$0xff] %v4518_v16  ;;  %6389 = vst [vmem:[#allocation13_spill] sm:$0xff] %v4520_v17  ;;  %v3502_v41 = vpop.f32.mrf.mxu0  ;;  %v4707_v16 = vadd.s32 152, %v4324_v50 }
 0x117   :  { %v779_v28 = vsel %vm747_vm1, %v712_v60, %v713_v45  ;;  %v716_v46 = vrot.slane %v3502_v41, 1  ;;  %v3574_v32 = vpop.f32.mrf.mxu1 }
 0x118   :  { %v4524_v33 = vadd.f32 %v3570_v61, %v779_v28  ;;  %v557_v36 = vpop.f32.mrf.mxu0  ;;  %v6359_v28 = vmov 0.0   ;;  %6420 = vst [vmem:[#allocation41_spill] sm:$0xff] %v4707_v16 }
 0x119   :  { %v776_v38 = vsel %vm747_vm1, %v715_v23, %v716_v46  ;;  %v714_v51 = vrot.slane %v557_v36, 1  ;;  %v1001_v53 = vpop.f32.mrf.mxu1  ;;  %3747 = vmatprep.subr.bf16.mxu0 %v6359_v28  ;;  %3767 = vmatprep.subr.bf16.mxu1 %v6359_v28 }
 0x11a   :  { %6390 = vst [vmem:[#allocation14_spill] sm:$0xff] %v4524_v33  ;;  %v4528_v54 = vadd.f32 %v3573_v12, %v776_v38  ;;  %v3505_v57 = vpop.f32.mrf.mxu0 }
 0x11b   :  { %v778_v43 = vsel %vm747_vm1, %v713_v45, %v714_v51  ;;  %v777_v44 = vsel %vm747_vm1, %v714_v51, %v715_v23  ;;  %v3577_v60 = vpop.f32.mrf.mxu1  ;;  %v719_v10 = vrot.slane %v3505_v57, 1  ;;  %v3837_v45 = vld [vmem:[%s6349_s4 + $0x38] sm:$0xff]  }
 0x11c   :  { %6391 = vst [vmem:[#allocation15_spill] sm:$0xff] %v4528_v54  ;;  %v4534_v47 = vadd.f32 %v998_v22, %v778_v43  ;;  %v4536_v61 = vadd.f32 %v1001_v53, %v777_v44  ;;  %v570_v1 = vpop.f32.mrf.mxu0  ;;  %3748 = vmatpush3.bf16.msra.mxu0 %v3837_v45 }
 0x11d   :  { %v717_v39 = vrot.slane %v570_v1, 1  ;;  %v1014_v8 = vpop.f32.mrf.mxu1  ;;  %3749 = vmatprep.subr.bf16.mxu0 %v6359_v28 }
 0x11e   :  { %6392 = vst [vmem:[#allocation16_spill] sm:$0xff] %v4534_v47  ;;  %6393 = vst [vmem:[#allocation17_spill] sm:$0xff] %v4536_v61  ;;  %v3506_v11 = vpop.f32.mrf.mxu0 }
 0x11f   :  { %v775_v12 = vsel %vm747_vm1, %v716_v46, %v717_v39  ;;  %v720_v18 = vrot.slane %v3506_v11, 1  ;;  %v3578_v41 = vpop.f32.mrf.mxu1 }
 0x120   :  { %v4545_v22 = vadd.f32 %v3574_v32, %v775_v12  ;;  %v573_v23 = vpop.f32.mrf.mxu0 }
 0x121   :  { %v772_v36 = vsel %vm747_vm1, %v719_v10, %v720_v18  ;;  %v718_v38 = vrot.slane %v573_v23, 1  ;;  %v1017_v51 = vpop.f32.mrf.mxu1 }
 0x122   :  { %6394 = vst [vmem:[#allocation18_spill] sm:$0xff] %v4545_v22  ;;  %v4549_v46 = vadd.f32 %v3577_v60, %v772_v36  ;;  %v3509_v53 = vpop.f32.mrf.mxu0 }
 0x123   :  { %v774_v57 = vsel %vm747_vm1, %v717_v39, %v718_v38  ;;  %v773_v43 = vsel %vm747_vm1, %v718_v38, %v719_v10  ;;  %v3581_v32 = vpop.f32.mrf.mxu1  ;;  %v723_v60 = vrot.slane %v3509_v53, 1 }
 0x124   :  { %6395 = vst [vmem:[#allocation19_spill] sm:$0xff] %v4549_v46  ;;  %v4556_v44 = vadd.f32 %v1014_v8, %v774_v57  ;;  %v4558_v1 = vadd.f32 %v1017_v51, %v773_v43  ;;  %v586_v11 = vpop.f32.mrf.mxu0 }
 0x125   :  { %v721_v12 = vrot.slane %v586_v11, 1  ;;  %v1030_v23 = vpop.f32.mrf.mxu1 }
 0x126   :  { %6396 = vst [vmem:[#allocation20_spill] sm:$0xff] %v4556_v44  ;;  %6397 = vst [vmem:[#allocation21_spill] sm:$0xff] %v4558_v1  ;;  %v3510_v45 = vpop.f32.mrf.mxu0  ;;  %v4646_v44 = vadd.s32 64, %v4324_v50 }
 0x127   :  { %v771_v36 = vsel %vm747_vm1, %v720_v18, %v721_v12  ;;  %v724_v59 = vrot.slane %v3510_v45, 1  ;;  %v3582_v42 = vpop.f32.mrf.mxu1 }
 0x128   :  { %v4562_v21 = vadd.f32 %v3578_v41, %v771_v36  ;;  %v589_v39 = vpop.f32.mrf.mxu0 }
 0x129   :  { %v768_v10 = vsel %vm747_vm1, %v723_v60, %v724_v59  ;;  %v722_v8 = vrot.slane %v589_v39, 1  ;;  %v1033_v38 = vpop.f32.mrf.mxu1 }
 0x12a   :  { %6398 = vst [vmem:[#allocation22_spill] sm:$0xff] %v4562_v21  ;;  %v4566_v51 = vadd.f32 %v3581_v32, %v768_v10  ;;  %v3513_v57 = vpop.f32.mrf.mxu0 }
 0x12b   :  { %v770_v43 = vsel %vm747_vm1, %v721_v12, %v722_v8  ;;  %v769_v53 = vsel %vm747_vm1, %v722_v8, %v723_v60  ;;  %v3585_v18 = vpop.f32.mrf.mxu1  ;;  %v727_v39 = vrot.slane %v3513_v57, 1 }
 0x12c   :  { %6399 = vst [vmem:[#allocation23_spill] sm:$0xff] %v4566_v51  ;;  %v4572_v11 = vadd.f32 %v1030_v23, %v770_v43  ;;  %v4574_v41 = vadd.f32 %v1033_v38, %v769_v53  ;;  %v602_v45 = vpop.f32.mrf.mxu0 }
 0x12d   :  { %v725_v36 = vrot.slane %v602_v45, 1  ;;  %v1046_v28 = vpop.f32.mrf.mxu1 }
 0x12e   :  { %6400 = vst [vmem:[#allocation24_spill] sm:$0xff] %v4572_v11  ;;  %6401 = vst [vmem:[#allocation25_spill] sm:$0xff] %v4574_v41  ;;  %v3514_v21 = vpop.f32.mrf.mxu0 }
 0x12f   :  { %v767_v32 = vsel %vm747_vm1, %v724_v59, %v725_v36  ;;  %v728_v10 = vrot.slane %v3514_v21, 1  ;;  %v3586_v51 = vpop.f32.mrf.mxu1  ;;  %v3838_v21 = vld [vmem:[%s6349_s4 + $0x30] sm:$0xff]  }
 0x130   :  { %v4578_v1 = vadd.f32 %v3582_v42, %v767_v32  ;;  %v605_v12 = vpop.f32.mrf.mxu0  ;;  %3750 = vmatpush3.bf16.msra.mxu0 %v3838_v21 }
 0x131   :  { %v764_v60 = vsel %vm747_vm1, %v727_v39, %v728_v10  ;;  %v726_v23 = vrot.slane %v605_v12, 1  ;;  %v1049_v8 = vpop.f32.mrf.mxu1 }
 0x132   :  { %6402 = vst [vmem:[#allocation26_spill] sm:$0xff] %v4578_v1  ;;  %v4582_v38 = vadd.f32 %v3585_v18, %v764_v60  ;;  %v3517_v43 = vpop.f32.mrf.mxu0 }
 0x133   :  { %v766_v53 = vsel %vm747_vm1, %v725_v36, %v726_v23  ;;  %v765_v57 = vsel %vm747_vm1, %v726_v23, %v727_v39  ;;  %v3589_v59 = vpop.f32.mrf.mxu1  ;;  %v731_v36 = vrot.slane %v3517_v43, 1 }
 0x134   :  { %6403 = vst [vmem:[#allocation27_spill] sm:$0xff] %v4582_v38  ;;  %v4591_v42 = vadd.f32 %v1046_v28, %v766_v53  ;;  %v4593_v45 = vadd.f32 %v1049_v8, %v765_v57  ;;  %v618_v32 = vpop.f32.mrf.mxu0  ;;  %v6406_v38 = vmov 0.0  }
 0x135   :  { %v729_v12 = vrot.slane %v618_v32, 1  ;;  %v1062_v18 = vpop.f32.mrf.mxu1  ;;  %3751 = vmatprep.subr.bf16.mxu0 %v6406_v38 }
 0x136   :  { %6404 = vst [vmem:[#allocation28_spill] sm:$0xff] %v4591_v42  ;;  %6405 = vst [vmem:[#allocation29_spill] sm:$0xff] %v4593_v45  ;;  %v3518_v60 = vpop.f32.mrf.mxu0 }
 0x137   :  { %v763_v39 = vsel %vm747_vm1, %v728_v10, %v729_v12  ;;  %v732_v23 = vrot.slane %v3518_v60, 1  ;;  %v3590_v1 = vpop.f32.mrf.mxu1 }
 0x138   :  { %v4598_v41 = vadd.f32 %v3586_v51, %v763_v39  ;;  %v621_v11 = vpop.f32.mrf.mxu0 }
 0x139   :  { %v760_v28 = vsel %vm747_vm1, %v731_v36, %v732_v23  ;;  %v730_v8 = vrot.slane %v621_v11, 1  ;;  %v1065_v53 = vpop.f32.mrf.mxu1  ;;  %v4613_v11 = vadd.s32 16, %v4324_v50 }
 0x13a   :  { %6407 = vst [vmem:[#allocation30_spill] sm:$0xff] %v4598_v41  ;;  %v4602_v57 = vadd.f32 %v3589_v59, %v760_v28  ;;  %v3521_v21 = vpop.f32.mrf.mxu0 }
 0x13b   :  { %v762_v32 = vsel %vm747_vm1, %v729_v12, %v730_v8  ;;  %v761_v43 = vsel %vm747_vm1, %v730_v8, %v731_v36  ;;  %v3593_v10 = vpop.f32.mrf.mxu1  ;;  %v735_v59 = vrot.slane %v3521_v21, 1  ;;  %v4618_v36 = vadd.s32 8, %v4324_v50 }
 0x13c   :  { %6408 = vst [vmem:[#allocation31_spill] sm:$0xff] %v4602_v57  ;;  %v4608_v60 = vadd.f32 %v1062_v18, %v762_v32  ;;  %v4610_v51 = vadd.f32 %v1065_v53, %v761_v43  ;;  %v634_v39 = vpop.f32.mrf.mxu0  ;;  %v4623_v53 = vadd.s32 24, %v4324_v50  ;;  %v4626_v32 = vadd.s32 48, %v4324_v50 }
 0x13d   :  { %v733_v41 = vrot.slane %v634_v39, 1  ;;  %v1078_v42 = vpop.f32.mrf.mxu1  ;;  %v4629_v43 = vadd.s32 32, %v4324_v50  ;;  %v4634_v39 = vadd.s32 40, %v4324_v50 }
 0x13e   :  { %6409 = vst [vmem:[#allocation32_spill] sm:$0xff] %v4608_v60  ;;  %6410 = vst [vmem:[#allocation33_spill] sm:$0xff] %v4610_v51  ;;  %v3522_v45 = vpop.f32.mrf.mxu0  ;;  %v4643_v51 = vadd.s32 80, %v4324_v50 }
 0x13f   :  { %v759_v28 = vsel %vm747_vm1, %v732_v23, %v733_v41  ;;  %v736_v12 = vrot.slane %v3522_v45, 1  ;;  %v3594_v57 = vpop.f32.mrf.mxu1 }
 0x140   :  { %v4620_v18 = vadd.f32 %v3590_v1, %v759_v28  ;;  %v637_v8 = vpop.f32.mrf.mxu0  ;;  %v4637_v1 = vadd.s32 56, %v4324_v50 }
 0x141   :  { %v756_v23 = vsel %vm747_vm1, %v735_v59, %v736_v12  ;;  %v734_v45 = vrot.slane %v637_v8, 1  ;;  %v1081_v21 = vpop.f32.mrf.mxu1 }
 0x142   :  { %6411 = vst [vmem:[#allocation34_spill] sm:$0xff] %v4620_v18  ;;  %v4639_v28 = vadd.f32 %v3593_v10, %v756_v23  ;;  %v3525_v18 = vpop.f32.mrf.mxu0 }
 0x143   :  { %v758_v8 = vsel %vm747_vm1, %v733_v41, %v734_v45  ;;  %v757_v46 = vsel %vm747_vm1, %v734_v45, %v735_v59  ;;  %v3597_v22 = vpop.f32.mrf.mxu1  ;;  %v739_v59 = vrot.slane %v3525_v18, 1 }
 0x144   :  { %6412 = vst [vmem:[#allocation35_spill] sm:$0xff] %v4639_v28  ;;  %v4654_v23 = vadd.f32 %v1078_v42, %v758_v8  ;;  %v4656_v60 = vadd.f32 %v1081_v21, %v757_v46  ;;  %v650_v28 = vpop.f32.mrf.mxu0  ;;  %v4665_v42 = vadd.s32 72, %v4324_v50  ;;  %v4669_v21 = vadd.s32 88, %v4324_v50 }
 0x145   :  { %v737_v33 = vrot.slane %v650_v28, 1  ;;  %v1094_v17 = vpop.f32.mrf.mxu1  ;;  %v6415_v28 = vrot.slane %v4414_v40, 1  ;;  %v6416_v8 = vrot.slane %v4437_v27, 1  ;;  %v4682_v46 = vadd.s32 112, %v4324_v50 }
 0x146   :  { %6413 = vst [vmem:[#allocation36_spill] sm:$0xff] %v4654_v23  ;;  %6414 = vst [vmem:[#allocation37_spill] sm:$0xff] %v4656_v60  ;;  %v3526_v61 = vpop.f32.mrf.mxu0  ;;  %v4685_v23 = vadd.s32 96, %v4324_v50  ;;  %v4688_v40 = vadd.s32 104, %v4324_v50 }
 0x147   :  { %v793_v54 = vsel %vm747_vm1, %v6416_v8, %v6415_v28  ;;  %v755_v45 = vsel %vm747_vm1, %v736_v12, %v737_v33  ;;  %v740_v10 = vrot.slane %v3526_v61, 1  ;;  %v3598_v41 = vpop.f32.mrf.mxu1  ;;  %v4693_v61 = vadd.s32 120, %v4324_v50 }
 0x148   :  { %v4679_v47 = vadd.f32 %v3594_v57, %v755_v45  ;;  %v653_v60 = vpop.f32.mrf.mxu0  ;;  %v4696_v57 = vadd.s32 144, %v4324_v50  ;;  %v4701_v8 = vadd.s32 128, %v4324_v50 }
 0x149   :  { %v752_v27 = vsel %vm747_vm1, %v739_v59, %v740_v10  ;;  %v738_v18 = vrot.slane %v653_v60, 1  ;;  %v1097_v28 = vpop.f32.mrf.mxu1  ;;  %v4710_v60 = vadd.f32 %v4444_v29, %v793_v54  ;;  %v3839_v29 = vld [vmem:[%s6349_s4 + $0x28] sm:$0xff]  }
 0x14a   :  { %6417 = vst [vmem:[#allocation38_spill] sm:$0xff] %v4679_v47  ;;  %6418 = vst [vmem:[#allocation39_spill] sm:$0xff] %v4696_v57  ;;  %v4698_v12 = vadd.f32 %v3597_v22, %v752_v27  ;;  %v3529_v45 = vpop.f32.mrf.mxu0  ;;  %v4704_v47 = vadd.s32 136, %v4324_v50  ;;  %3752 = vmatpush3.bf16.msra.mxu0 %v3839_v29 }
 0x14b   :  { %6421 = vst [vmem:[#allocation42_spill] sm:$0xff] %v4710_v60  ;;  %v754_v3 = vsel %vm747_vm1, %v737_v33, %v738_v18  ;;  %v753_v22 = vsel %vm747_vm1, %v738_v18, %v739_v59  ;;  %v3601_v27 = vpop.f32.mrf.mxu1  ;;  %3753 = vmatprep.subr.bf16.mxu0 %v6406_v38 }
 0x14c   :  { %6419 = vst [vmem:[#allocation40_spill] sm:$0xff] %v4698_v12  ;;  %v4717_v62 = vadd.f32 %v1094_v17, %v754_v3  ;;  %v4719_v48 = vadd.f32 %v1097_v28, %v753_v22  ;;  %v666_v37 = vpop.f32.mrf.mxu0  ;;  %v4738_v3 = vadd.s32 176, %v4324_v50 }
 0x14d   :  { %v741_v33 = vrot.slane %v666_v37, 1  ;;  %v1110_v54 = vpop.f32.mrf.mxu1  ;;  %v743_v37 = vrot.slane %v3529_v45, 1  ;;  %v4747_v45 = vadd.s32 168, %v4324_v50 }
 0x14e   :  { %6422 = vst [vmem:[#allocation43_spill] sm:$0xff] %v4717_v62  ;;  %6423 = vst [vmem:[#allocation44_spill] sm:$0xff] %v4719_v48  ;;  %v3530_v17 = vpop.f32.mrf.mxu0 }
 0x14f   :  { %v751_v59 = vsel %vm747_vm1, %v740_v10, %v741_v33  ;;  %v744_v12 = vrot.slane %v3530_v17, 1  ;;  %v3602_v18 = vpop.f32.mrf.mxu1  ;;  %6424 = vst [vmem:[#allocation45_spill] sm:$0xff] %v4738_v3  ;;  %6426 = vst [vmem:[#allocation47_spill] sm:$0xff] %v4747_v45  ;;  %v4750_v10 = vadd.s32 184, %v4324_v50  ;;  %v6428_v17 = vrot.slane %v4330_v52, 1 }
 0x150   :  { %v4741_v28 = vadd.f32 %v3598_v41, %v751_v59  ;;  %v669_v22 = vpop.f32.mrf.mxu0 }
 0x151   :  { %6427 = vst [vmem:[#allocation48_spill] sm:$0xff] %v4750_v10  ;;  %v748_v29 = vsel %vm747_vm1, %v743_v37, %v744_v12  ;;  %v811_v31 = vsel %vm747_vm1, %v744_v12, %v6428_v17  ;;  %v742_v41 = vrot.slane %v669_v22, 1  ;;  %v1113_v59 = vpop.f32.mrf.mxu1  ;;  %v4776_v17 = vadd.s32 216, %v4324_v50 }
 0x152   :  { %6425 = vst [vmem:[#allocation46_spill] sm:$0xff] %v4741_v28  ;;  %v4759_v28 = vadd.s32 208, %v4324_v50  ;;  %v4761_v48 = vadd.f32 %v3601_v27, %v748_v29  ;;  %v4763_v62 = vadd.f32 %v3602_v18, %v811_v31  ;;  %v3613_v7 = vpop.f32.mrf.mxu0  ;;  %v4779_v31 = vadd.s32 240, %v4324_v50 }
 0x153   :  { %v750_v52 = vsel %vm747_vm1, %v741_v33, %v742_v41  ;;  %v749_v12 = vsel %vm747_vm1, %v742_v41, %v743_v37  ;;  %v3685_v22 = vpop.f32.mrf.mxu1  ;;  %6434 = vst [vmem:[#allocation54_spill] sm:$0xff] %v4776_v17  ;;  %v4791_v33 = vadd.s32 232, %v4324_v50  ;;  %v1449_v16 = vrot.slane %v3613_v7, 2 }
 0x154   :  { %6429 = vst [vmem:[#allocation49_spill] sm:$0xff] %v4759_v28  ;;  %6430 = vst [vmem:[#allocation50_spill] sm:$0xff] %v4761_v48  ;;  %v4781_v27 = vadd.f32 %v1110_v54, %v750_v52  ;;  %v4783_v18 = vadd.f32 %v1113_v59, %v749_v12  ;;  %v4785_v29 = vpop.f32.mrf.mxu0  ;;  %v1964_v58 = vrot.slane %v3685_v22, 3  ;;  %v4810_v52 = vld [vmem:[%s6350_s3] ss:$0 sm:$0xff]  ;;  %v6446_v48 = vand.u32 31, %v4618_v36 }
 0x155   :  { %6431 = vst [vmem:[#allocation51_spill] sm:$0xff] %v4763_v62  ;;  %6435 = vst [vmem:[#allocation55_spill] sm:$0xff] %v4779_v31  ;;  %v4788_v62 = vadd.s32 224, %v4324_v50  ;;  %v4793_v37 = vpop.f32.mrf.mxu1  ;;  %v4832_v54 = vadd.s32 272, %v4324_v50  ;;  %v6450_v36 = vand.u32 31, %v4613_v11  ;;  %v6455_v10 = vand.u32 31, %v4623_v53 }
 0x156   :  { %6436 = vst [vmem:[#allocation56_spill] sm:$0xff] %v4781_v27  ;;  %6437 = vst [vmem:[#allocation57_spill] sm:$0xff] %v4783_v18  ;;  %v3614_v59 = vpop.f32.mrf.mxu0  ;;  %v4803_v27 = vadd.s32 248, %v4324_v50  ;;  %vm4827_vm5 = vcmp.lt.s32.totalorder %v6446_v48, %v4810_v52  ;;  %v4842_v48 = vld [vmem:[%s6351_s2] ss:$0 sm:$0xff] }
 0x157   :  { %6438 = vst [vmem:[#allocation58_spill] sm:$0xff] %v4785_v29  ;;  %6439 = vst [vmem:[#allocation59_spill] sm:$0xff] %v4788_v62  ;;  %v1450_v57 = vrot.slane %v3614_v59, 2  ;;  %v3686_v60 = vpop.f32.mrf.mxu1  ;;  %vm4847_vm6 = vcmp.lt.s32.totalorder %v6450_v36, %v4810_v52  ;;  %v4860_v62 = vadd.s32 256, %v4324_v50  ;;  %vm4873_vm7 = vcmp.lt.s32.totalorder %v6455_v10, %v4810_v52  ;;  %v3840_v18 = vld [vmem:[%s6349_s4 + $0x20] sm:$0xff]  }
 0x158   :  { %6440 = vst [vmem:[#allocation60_spill] sm:$0xff] %v4791_v33  ;;  %6441 = vst [vmem:[#allocation61_spill] sm:$0xff] %v4793_v37  ;;  %v1965_v3 = vrot.slane %v3686_v60, 3  ;;  %v1195_v12 = vpop.f32.mrf.mxu0  ;;  %v6443_v60 = vand.u32 31, %v4324_v50  ;;  %3754 = vmatpush3.bf16.msra.mxu0 %v3840_v18 }
 0x159   :  { %6442 = vst [vmem:[#allocation62_spill] sm:$0xff] %v4803_v27  ;;  %v1572_v59 = vsel %vm1511_vm2, %v1449_v16, %v1450_v57  ;;  %v1448_v41 = vrot.slane %v1195_v12, 2  ;;  %v1710_v17 = vpop.f32.mrf.mxu1  ;;  %6449 = vst [vmem:[#allocation63_spill] sm:$0xff] %v4832_v54  ;;  %3755 = vmatprep.subr.bf16.mxu0 %v6406_v38 }
 0x15a   :  { %vm4820_vm4 = vcmp.lt.s32.totalorder %v6443_v60, %v4810_v52  ;;  %v1578_v12 = vadd.f32 %v1572_v59, %v4338_v63  ;;  %v2087_v7 = vsel %vm2026_vm3, %v1964_v58, %v1965_v3  ;;  %v1963_v31 = vrot.slane %v1710_v17, 3  ;;  %v3617_v60 = vpop.f32.mrf.mxu0 }
 0x15b   :  { %v1573_v63 = vsel %vm1511_vm2, %v1448_v41, %v1449_v16  ;;  %v6453_v17 = vrot.slane %v4785_v29, 2  ;;  %v4857_v33 = vpop.f32.mrf.mxu1  ;;  %v6454_v16 = vrot.slane %v4793_v37, 3 }
 0x15c   :  { %v2093_v27 = vadd.f32 %v2087_v7, %v1578_v12  ;;  %v1577_v36 = vadd.f32 %v1573_v63, %v4354_v5  ;;  %v2088_v0 = vsel %vm2026_vm3, %v1963_v31, %v1964_v58  ;;  %v1208_v6 = vpop.f32.mrf.mxu0  ;;  %v4879_v5 = vadd.s32 264, %v4324_v50 }
 0x15d   :  { %v1574_v59 = vsel %vm1511_vm2, %v6453_v17, %v1448_v41  ;;  %v2089_v29 = vsel %vm2026_vm3, %v6454_v16, %v1963_v31  ;;  %v1451_v41 = vrot.slane %v1208_v6, 2  ;;  %v1723_v17 = vpop.f32.mrf.mxu1  ;;  %v1453_v6 = vrot.slane %v3617_v60, 2 }
 0x15e   :  { %v1576_v11 = vadd.f32 %v1574_v59, %v4352_v4  ;;  %v2164_v58 = vadd.f32 %v4842_v48, %v2093_v27  ;;  %v2092_v63 = vadd.f32 %v2088_v0, %v1577_v36  ;;  %v1966_v59 = vrot.slane %v1723_v17, 3  ;;  %v3618_v31 = vpop.f32.mrf.mxu0 }
 0x15f   :  { %v1571_v16 = vsel %vm1511_vm2, %v1450_v57, %v1451_v41  ;;  %v1454_v53 = vrot.slane %v3618_v31, 2  ;;  %v4884_v10 = vpop.f32.mrf.mxu1  ;;  %v1968_v45 = vrot.slane %v4857_v33, 3 }
 0x160   :  { %v2091_v12 = vadd.f32 %v2089_v29, %v1576_v11  ;;  %v2163_v54 = vadd.f32 %v4842_v48, %v2092_v63  ;;  %v1579_v27 = vadd.f32 %v1571_v16, %v4360_v14  ;;  %v1211_v0 = vpop.f32.mrf.mxu0  ;;  %v2086_v29 = vsel %vm2026_vm3, %v1965_v3, %v1966_v59 }
 0x161   :  { %v1568_v57 = vsel %vm1511_vm2, %v1453_v6, %v1454_v53  ;;  %v1969_v60 = vrot.slane %v4884_v10, 3  ;;  %v1452_v11 = vrot.slane %v1211_v0, 2  ;;  %v1726_v36 = vpop.f32.mrf.mxu1  ;;  %v2228_v17 = vmax.f32 %v2164_v58, 0.0 }
 0x162   :  { %v2162_v4 = vadd.f32 %v4842_v48, %v2091_v12  ;;  %v2227_v12 = vmax.f32 %v2163_v54, 0.0  ;;  %v2094_v37 = vadd.f32 %v2086_v29, %v1579_v27  ;;  %v4896_v63 = vpop.f32.mrf.mxu0  ;;  %v1582_v33 = vadd.f32 %v1568_v57, %v4364_v19 }
 0x163   :  { %v2083_v14 = vsel %vm2026_vm3, %v1968_v45, %v1969_v60  ;;  %v1569_v3 = vsel %vm1511_vm2, %v1452_v11, %v1453_v6  ;;  %v1570_v16 = vsel %vm1511_vm2, %v1451_v41, %v1452_v11  ;;  %v6458_v10 = vand.u32 31, %v4629_v43  ;;  %v4919_v58 = vpop.f32.mrf.mxu1 }
 0x164   :  { %v2226_v31 = vmax.f32 %v2162_v4, 0.0  ;;  %v6461_v54 = vand.u32 31, %v4634_v39  ;;  %v2487_v41 = vsel %vm4827_vm5, %v2227_v12, 0.0  ;;  %v2165_v43 = vadd.f32 %v4842_v48, %v2094_v37  ;;  %v1224_v0 = vpop.f32.mrf.mxu0 }
 0x165   :  { %vm4908_vm8 = vcmp.lt.s32.totalorder %v6458_v10, %v4810_v52  ;;  %v1580_v27 = vadd.f32 %v1570_v16, %v4376_v24  ;;  %v2097_v57 = vadd.f32 %v2083_v14, %v1582_v33  ;;  %v6464_v39 = vand.u32 31, %v4626_v32  ;;  %v4935_v10 = vpop.f32.mrf.mxu1 }
 0x166   :  { %vm4915_vm9 = vcmp.lt.s32.totalorder %v6461_v54, %v4810_v52  ;;  %v2486_v6 = vsel %vm4820_vm4, %v2226_v31, 0.0  ;;  %v1581_v22 = vadd.f32 %v1569_v3, %v4378_v25  ;;  %v1967_v31 = vrot.slane %v1726_v36, 3  ;;  %v4943_v33 = vpop.f32.mrf.mxu0 }
 0x167   :  { %v2550_v29 = vmax.f32 %v2486_v6, %v2487_v41  ;;  %vm4930_vm10 = vcmp.lt.s32.totalorder %v6464_v39, %v4810_v52  ;;  %v2488_v24 = vsel %vm4847_vm6, %v2228_v17, 0.0  ;;  %v2229_v37 = vmax.f32 %v2165_v43, 0.0  ;;  %v4957_v17 = vpop.f32.mrf.mxu1 }
 0x168   :  { %v1457_v12 = vrot.slane %v4896_v63, 2  ;;  %v1455_v32 = vrot.slane %v1224_v0, 2  ;;  %v2168_v16 = vadd.f32 %v4842_v48, %v2097_v57  ;;  %v2084_v25 = vsel %vm2026_vm3, %v1967_v31, %v1968_v45  ;;  %v1227_v41 = vpop.f32.mrf.mxu0 }
 0x169   :  { %v2551_v14 = vmax.f32 %v2550_v29, %v2488_v24  ;;  %v2085_v36 = vsel %vm2026_vm3, %v1966_v59, %v1967_v31  ;;  %v6467_v3 = vand.u32 31, %v4637_v1  ;;  %v2489_v63 = vsel %vm4873_vm7, %v2229_v37, 0.0  ;;  %v1742_v29 = vpop.f32.mrf.mxu1 }
 0x16a   :  { %v2095_v54 = vadd.f32 %v2085_v36, %v1580_v27  ;;  %v2096_v6 = vadd.f32 %v2084_v25, %v1581_v22  ;;  %v1567_v45 = vsel %vm1511_vm2, %v1454_v53, %v1455_v32  ;;  %v1972_v1 = vrot.slane %v4919_v58, 3  ;;  %v4971_v53 = vpop.f32.mrf.mxu0 }
 0x16b   :  { %vm4953_vm11 = vcmp.lt.s32.totalorder %v6467_v3, %v4810_v52  ;;  %v2552_v59 = vmax.f32 %v2551_v14, %v2489_v63  ;;  %v1583_v43 = vadd.f32 %v1567_v45, %v4384_v34  ;;  %v1970_v0 = vrot.slane %v4935_v10, 3  ;;  %v4975_v34 = vpop.f32.mrf.mxu1 }
 0x16c   :  { %v2166_v57 = vadd.f32 %v4842_v48, %v2095_v54  ;;  %v2167_v7 = vadd.f32 %v4842_v48, %v2096_v6  ;;  %v1458_v27 = vrot.slane %v4943_v33, 2  ;;  %v1973_v39 = vrot.slane %v4957_v17, 3 }
 0x16d   :  { %v2553_v22 = vrot.slane %v2552_v59, 4  ;;  %v2232_v31 = vmax.f32 %v2168_v16, 0.0  ;;  %v2082_v58 = vsel %vm2026_vm3, %v1969_v60, %v1970_v0  ;;  %v1456_v18 = vrot.slane %v1227_v41, 2  ;;  %v4986_v16 = vpop.f32.mrf.mxu0  ;;  %v4995_v54 = vpop.f32.mrf.mxu1 }
 0x16e   :  { %v2230_v10 = vmax.f32 %v2166_v57, 0.0  ;;  %v2231_v24 = vmax.f32 %v2167_v7, 0.0  ;;  %v2098_v37 = vadd.f32 %v2082_v58, %v1583_v43  ;;  %v1564_v14 = vsel %vm1511_vm2, %v1457_v12, %v1458_v27 }
 0x16f   :  { %v6470_v33 = vand.u32 31, %v4643_v51  ;;  %v2554_v36 = vmax.f32 %v2552_v59, %v2553_v22  ;;  %v1586_v60 = vadd.f32 %v1564_v14, %v4388_v49  ;;  %v2079_v3 = vsel %vm2026_vm3, %v1972_v1, %v1973_v39 }
 0x170   :  { %v1565_v63 = vsel %vm1511_vm2, %v1456_v18, %v1457_v12  ;;  %v2490_v51 = vsel %vm4908_vm8, %v2230_v10, 0.0  ;;  %v2491_v6 = vsel %vm4915_vm9, %v2231_v24, 0.0  ;;  %v2169_v45 = vadd.f32 %v4842_v48, %v2098_v37  ;;  %v5011_v12 = vpop.f32.mrf.mxu0 }
 0x171   :  { %vm4982_vm12 = vcmp.lt.s32.totalorder %v6470_v33, %v4810_v52  ;;  %v1566_v49 = vsel %vm1511_vm2, %v1455_v32, %v1456_v18  ;;  %v6473_v41 = vand.u32 31, %v4646_v44  ;;  %v2555_v43 = vrot.slane %v2554_v36, 2  ;;  %v5021_v32 = vpop.f32.mrf.mxu1 }
 0x172   :  { %v2559_v4 = vmax.f32 %v2490_v51, %v2491_v6  ;;  %v2101_v57 = vadd.f32 %v2079_v3, %v1586_v60  ;;  %v1584_v19 = vadd.f32 %v1566_v49, %v4400_v55  ;;  %v6476_v7 = vand.u32 31, %v4665_v42  ;;  %v1243_v24 = vpop.f32.mrf.mxu0 }
 0x173   :  { %vm5007_vm13 = vcmp.lt.s32.totalorder %v6473_v41, %v4810_v52  ;;  %v2492_v44 = vsel %vm4930_vm10, %v2232_v31, 0.0  ;;  %v2233_v58 = vmax.f32 %v2169_v45, 0.0  ;;  %v1585_v18 = vadd.f32 %v1565_v63, %v4402_v56  ;;  %v5028_v33 = vpop.f32.mrf.mxu1 }
 0x174   :  { %vm5017_vm14 = vcmp.lt.s32.totalorder %v6476_v7, %v4810_v52  ;;  %v1971_v10 = vrot.slane %v1742_v29, 3  ;;  %v2556_v37 = vmax.f32 %v2554_v36, %v2555_v43  ;;  %v2560_v14 = vmax.f32 %v2559_v4, %v2492_v44  ;;  %v5037_v29 = vpop.f32.mrf.mxu0 }
 0x175   :  { %v2172_v55 = vadd.f32 %v4842_v48, %v2101_v57  ;;  %v1461_v42 = vrot.slane %v4971_v53, 2  ;;  %v2493_v60 = vsel %vm4953_vm11, %v2233_v58, 0.0  ;;  %v1459_v56 = vrot.slane %v4986_v16, 2  ;;  %v5046_v6 = vpop.f32.mrf.mxu1 }
 0x176   :  { %v2080_v11 = vsel %vm2026_vm3, %v1971_v10, %v1972_v1  ;;  %v2081_v31 = vsel %vm2026_vm3, %v1970_v0, %v1971_v10  ;;  %v2557_v36 = vrot.slane %v2556_v37, 1  ;;  %v2561_v3 = vmax.f32 %v2560_v14, %v2493_v60  ;;  %v5052_v49 = vpop.f32.mrf.mxu0 }
 0x177   :  { %v2236_v63 = vmax.f32 %v2172_v55, 0.0  ;;  %v2099_v51 = vadd.f32 %v2081_v31, %v1584_v19  ;;  %v6479_v53 = vand.u32 31, %v4669_v21  ;;  %v2100_v1 = vadd.f32 %v2080_v11, %v1585_v18  ;;  %v5058_v57 = vpop.f32.mrf.mxu1 }
 0x178   :  { %v1563_v0 = vsel %vm1511_vm2, %v1458_v27, %v1459_v56  ;;  %v1974_v16 = vrot.slane %v4995_v54, 3  ;;  %v1462_v45 = vrot.slane %v5011_v12, 2  ;;  %v5054_v41 = vmax.f32 %v2556_v37, %v2557_v36  ;;  %v5070_v44 = vpop.f32.mrf.mxu0 }
 0x179   :  { %vm5042_vm15 = vcmp.lt.s32.totalorder %v6479_v53, %v4810_v52  ;;  %v2562_v43 = vrot.slane %v2561_v3, 4  ;;  %v2170_v21 = vadd.f32 %v4842_v48, %v2099_v51  ;;  %v1976_v4 = vrot.slane %v4975_v34, 3 }
 0x17a   :  { %v2171_v19 = vadd.f32 %v4842_v48, %v2100_v1  ;;  %v1587_v27 = vadd.f32 %v1563_v0, %v4408_v2  ;;  %v2078_v54 = vsel %vm2026_vm3, %v1973_v39, %v1974_v16  ;;  %v1560_v7 = vsel %vm1511_vm2, %v1461_v42, %v1462_v45  ;;  %v5075_v2 = vpop.f32.mrf.mxu1  ;;  %v5078_v55 = vpop.f32.mrf.mxu0 }
 0x17b   :  { %v2563_v34 = vmax.f32 %v2561_v3, %v2562_v43  ;;  %v2496_v58 = vsel %vm4982_vm12, %v2236_v63, 0.0  ;;  %v2234_v18 = vmax.f32 %v2170_v21, 0.0  ;;  %v1590_v10 = vadd.f32 %v1560_v7, %v4412_v9 }
 0x17c   :  { %v2235_v17 = vmax.f32 %v2171_v19, 0.0  ;;  %v2102_v37 = vadd.f32 %v2078_v54, %v1587_v27  ;;  %v1977_v39 = vrot.slane %v5021_v32, 3  ;;  %v1460_v14 = vrot.slane %v1243_v24, 2  ;;  %v5099_v3 = vpop.f32.mrf.mxu1  ;;  %v5115_v53 = vpop.f32.mrf.mxu0 }
 0x17d   :  { %v2694_v60 = vpack.c.bf16 %v5054_v41, %v5054_v41  ;;  %v2564_v11 = vrot.slane %v2563_v34, 2  ;;  %v2494_v25 = vsel %vm5007_vm13, %v2234_v18, 0.0  ;;  %v1975_v31 = vrot.slane %v5028_v33, 3 }
 0x17e   :  { %v6482_v9 = vand.u32 31, %v4685_v23  ;;  %v6485_v32 = vand.u32 31, %v4688_v40  ;;  %v2495_v59 = vsel %vm5017_vm14, %v2235_v17, 0.0  ;;  %v2173_v33 = vadd.f32 %v4842_v48, %v2102_v37  ;;  %v5119_v21 = vpop.f32.mrf.mxu1  ;;  %v5125_v7 = vpop.f32.mrf.mxu0 }
 0x17f   :  { %v2075_v23 = vsel %vm2026_vm3, %v1976_v4, %v1977_v39  ;;  %v6488_v63 = vand.u32 31, %v4682_v46  ;;  %v1561_v40 = vsel %vm1511_vm2, %v1460_v14, %v1461_v42  ;;  %v2565_v1 = vmax.f32 %v2563_v34, %v2564_v11 }
 0x180   :  { %vm5088_vm1 = vcmp.lt.s32.totalorder %v6482_v9, %v4810_v52  ;;  %vm5095_vm4 = vcmp.lt.s32.totalorder %v6485_v32, %v4810_v52  ;;  %v2568_v22 = vmax.f32 %v2494_v25, %v2495_v59  ;;  %v2105_v0 = vadd.f32 %v2075_v23, %v1590_v10 }
 0x181   :  { %vm5109_vm5 = vcmp.lt.s32.totalorder %v6488_v63, %v4810_v52  ;;  %v1562_v43 = vsel %vm1511_vm2, %v1459_v56, %v1460_v14  ;;  %v2237_v19 = vmax.f32 %v2173_v33, 0.0  ;;  %v1589_v27 = vadd.f32 %v1561_v40, %v4428_v15  ;;  %v5130_v56 = vpop.f32.mrf.mxu1  ;;  %v5134_v15 = vpop.f32.mrf.mxu0 }
 0x182   :  { %v1588_v46 = vadd.f32 %v1562_v43, %v4426_v13  ;;  %v2076_v54 = vsel %vm2026_vm3, %v1975_v31, %v1976_v4  ;;  %v2566_v42 = vrot.slane %v2565_v1, 1  ;;  %v2569_v18 = vmax.f32 %v2568_v22, %v2496_v58 }
 0x183   :  { %v2176_v34 = vadd.f32 %v4842_v48, %v2105_v0  ;;  %v2077_v10 = vsel %vm2026_vm3, %v1974_v16, %v1975_v31  ;;  %v2497_v17 = vsel %vm5042_vm15, %v2237_v19, 0.0  ;;  %v2104_v37 = vadd.f32 %v2076_v54, %v1589_v27  ;;  %v5141_v25 = vpop.f32.mrf.mxu1  ;;  %v5157_v33 = vpop.f32.mrf.mxu0 }
 0x184   :  { %v2103_v13 = vadd.f32 %v2077_v10, %v1588_v46  ;;  %v5137_v4 = vadd.s32 280, %v4324_v50  ;;  %v2749_v14 = vunpack.c.l.b16 %v2694_v60  ;;  %v2567_v11 = vmax.f32 %v2565_v1, %v2566_v42 }
 0x185   :  { %v5139_v58 = vmax.f32 %v2569_v18, %v2497_v17  ;;  %v5144_v16 = vadd.s32 304, %v4324_v50  ;;  %v2175_v28 = vadd.f32 %v4842_v48, %v2104_v37  ;;  %v1463_v9 = vrot.slane %v5052_v49, 2  ;;  %v5164_v49 = vpop.f32.mrf.mxu1  ;;  %v5175_v43 = vpop.f32.mrf.mxu0 }
 0x186   :  { %v2174_v31 = vadd.f32 %v4842_v48, %v2103_v13  ;;  %v1978_v32 = vrot.slane %v5058_v57, 3  ;;  %v6491_v59 = vand.u32 31, %v4693_v61  ;;  %v2695_v23 = vpack.c.bf16 %v2567_v11, %v2567_v11  ;;  %v3841_v61 = vld [vmem:[%s6349_s4 + $0x18] sm:$0xff]  }
 0x187   :  { %v5161_v63 = vsel %vm2765_vm0, %v2567_v11, %v5054_v41  ;;  %v2240_v40 = vmax.f32 %v2176_v34, 0.0  ;;  %v1465_v1 = vrot.slane %v5037_v29, 2  ;;  %v2239_v22 = vmax.f32 %v2175_v28, 0.0  ;;  %v5180_v54 = vpop.f32.mrf.mxu1  ;;  %3756 = vmatpush3.bf16.msra.mxu0 %v3841_v61  ;;  %v5188_v18 = vpop.f32.mrf.mxu0 }
 0x188   :  { %vm5153_vm6 = vcmp.lt.s32.totalorder %v6491_v59, %v4810_v52  ;;  %v2238_v57 = vmax.f32 %v2174_v31, 0.0  ;;  %v1559_v0 = vsel %vm1511_vm2, %v1462_v45, %v1463_v9  ;;  %v2074_v41 = vsel %vm2026_vm3, %v1977_v39, %v1978_v32  ;;  %3757 = vmatprep.subr.bf16.mxu0 %v6406_v38 }
 0x189   :  { %v2750_v19 = vunpack.c.l.b16 %v2695_v23  ;;  %v1980_v29 = vrot.slane %v5046_v6, 3  ;;  %v1591_v46 = vadd.f32 %v1559_v0, %v4435_v26  ;;  %v1466_v27 = vrot.slane %v5070_v44, 2  ;;  %v5196_v34 = vpop.f32.mrf.mxu1  ;;  %v5213_v13 = vpop.f32.mrf.mxu0  ;;  %v6500_v23 = vld [vmem:[#allocation42_spill] sm:$0xff] }
 0x18a   :  { %v2498_v12 = vsel %vm5088_vm1, %v2238_v57, 0.0  ;;  %v2499_v45 = vsel %vm5095_vm4, %v2239_v22, 0.0  ;;  %v1981_v39 = vrot.slane %v5075_v2, 3  ;;  %v1464_v42 = vrot.slane %v5078_v55, 2  ;;  %v6501_v22 = vld [vmem:[#allocation39_spill] sm:$0xff] }
 0x18b   :  { %v5192_v26 = vsel %vm2765_vm0, %v2750_v19, %v2749_v14  ;;  %v2500_v6 = vsel %vm5109_vm5, %v2240_v40, 0.0  ;;  %v2577_v44 = vmax.f32 %v2498_v12, %v2499_v45  ;;  %v2106_v36 = vadd.f32 %v2074_v41, %v1591_v46  ;;  %v5230_v61 = vpop.f32.mrf.mxu0 }
 0x18c   :  { %v1556_v24 = vsel %vm1511_vm2, %v1465_v1, %v1466_v27  ;;  %v2071_v2 = vsel %vm2026_vm3, %v1980_v29, %v1981_v39  ;;  %v1557_v55 = vsel %vm1511_vm2, %v1464_v42, %v1465_v1  ;;  %v1558_v10 = vsel %vm1511_vm2, %v1463_v9, %v1464_v42  ;;  %v5224_v9 = vpop.f32.mrf.mxu1 }
 0x18d   :  { %v6494_v51 = vand.u32 31, %v4701_v8  ;;  %v2177_v37 = vadd.f32 %v4842_v48, %v2106_v36  ;;  %v2578_v14 = vmax.f32 %v2577_v44, %v2500_v6  ;;  %v1594_v11 = vadd.f32 %v1556_v24, %v4446_v30  ;;  %v6505_v6 = vld [vmem:[#allocation41_spill] sm:$0xff]  ;;  %v5259_v24 = vpop.f32.mrf.mxu0 }
 0x18e   :  { %v6497_v31 = vand.u32 31, %v4704_v47  ;;  %v2386_v8 = vand.u32 31, %v4879_v5  ;;  %v1592_v59 = vadd.f32 %v1558_v10, %v4458_v35  ;;  %v1593_v40 = vadd.f32 %v1557_v55, %v6500_v23  ;;  %v5240_v19 = vpop.f32.mrf.mxu1 }
 0x18f   :  { %vm5209_vm7 = vcmp.lt.s32.totalorder %v6494_v51, %v4810_v52  ;;  %v1979_v1 = vrot.slane %v5099_v3, 3  ;;  %v2241_v57 = vmax.f32 %v2177_v37, 0.0  ;;  %v2109_v47 = vadd.f32 %v2071_v2, %v1594_v11  ;;  %v5275_v11 = vpop.f32.mrf.mxu0 }
 0x190   :  { %vm5220_vm8 = vcmp.lt.s32.totalorder %v6497_v31, %v4810_v52  ;;  %v6502_v0 = vand.u32 31, %v6501_v22  ;;  %v5244_v46 = vadd.s32 288, %v4324_v50  ;;  %v1467_v45 = vrot.slane %v5125_v7, 2 }
 0x191   :  { %v2072_v3 = vsel %vm2026_vm3, %v1979_v1, %v1980_v29  ;;  %v2073_v12 = vsel %vm2026_vm3, %v1978_v32, %v1979_v1  ;;  %v1982_v42 = vrot.slane %v5130_v56, 3  ;;  %v6506_v44 = vand.u32 31, %v6505_v6  ;;  %v5264_v32 = vpop.f32.mrf.mxu1 }
 0x192   :  { %vm5236_vm9 = vcmp.lt.s32.totalorder %v6502_v0, %v4810_v52  ;;  %v2501_v2 = vsel %vm5153_vm6, %v2241_v57, 0.0  ;;  %v2180_v29 = vadd.f32 %v4842_v48, %v2109_v47  ;;  %v2107_v55 = vadd.f32 %v2073_v12, %v1592_v59  ;;  %v6509_v59 = vld [vmem:[#allocation2_spill] sm:$0xff]  ;;  %v5287_v47 = vpop.f32.mrf.mxu0 }
 0x193   :  { %vm5255_vm10 = vcmp.lt.s32.totalorder %v6506_v44, %v4810_v52  ;;  %v5267_v7 = vadd.s32 296, %v4324_v50  ;;  %v5269_v56 = vmax.f32 %v2578_v14, %v2501_v2  ;;  %v2108_v10 = vadd.f32 %v2072_v3, %v1593_v40  ;;  %v5280_v1 = vpop.f32.mrf.mxu1  ;;  %v6529_v14 = vld [vmem:[#allocation7_spill] sm:$0xff] }
 0x194   :  { %v1555_v51 = vsel %vm1511_vm2, %v1466_v27, %v1467_v45  ;;  %v2070_v37 = vsel %vm2026_vm3, %v1981_v39, %v1982_v42  ;;  %v2178_v60 = vadd.f32 %v4842_v48, %v2107_v55  ;;  %v1469_v31 = vrot.slane %v5115_v53, 2  ;;  %v5315_v17 = vpop.f32.mrf.mxu0 }
 0x195   :  { %v1595_v23 = vadd.f32 %v1555_v51, %v6509_v59  ;;  %v2179_v40 = vadd.f32 %v4842_v48, %v2108_v10  ;;  %v1984_v57 = vrot.slane %v5119_v21, 3  ;;  %v1470_v27 = vrot.slane %v5134_v15, 2  ;;  %v5289_v3 = vpop.f32.mrf.mxu1  ;;  %v6510_v10 = vld [vmem:[#allocation3_spill] sm:$0xff] }
 0x196   :  { %v1985_v39 = vrot.slane %v5141_v25, 3  ;;  %v2242_v22 = vmax.f32 %v2178_v60, 0.0  ;;  %v5293_v12 = vadd.s32 312, %v4324_v50  ;;  %v2244_v6 = vmax.f32 %v2180_v29, 0.0 }
 0x197   :  { %v2110_v0 = vadd.f32 %v2070_v37, %v1595_v23  ;;  %v2243_v44 = vmax.f32 %v2179_v40, 0.0  ;;  %v1552_v21 = vsel %vm1511_vm2, %v1469_v31, %v1470_v27  ;;  %v2571_v25 = vrot.slane %v5139_v58, 4 }
 0x198   :  { %v2067_v15 = vsel %vm2026_vm3, %v1984_v57, %v1985_v39  ;;  %v2502_v2 = vsel %vm5209_vm7, %v2242_v22, 0.0  ;;  %v1598_v51 = vadd.f32 %v1552_v21, %v6510_v10  ;;  %v1468_v29 = vrot.slane %v5157_v33, 2  ;;  %v6523_v21 = vld [vmem:[#allocation5_spill] sm:$0xff] }
 0x199   :  { %v2181_v55 = vadd.f32 %v4842_v48, %v2110_v0  ;;  %v2503_v37 = vsel %vm5220_vm8, %v2243_v44, 0.0  ;;  %v1983_v60 = vrot.slane %v5164_v49, 3  ;;  %v6511_v59 = vand.u32 31, %v4744_v20  ;;  %v6514_v44 = vld [vmem:[#allocation47_spill] sm:$0xff]  ;;  %v5327_v20 = vpop.f32.mrf.mxu1 }
 0x19a   :  { %v5318_v40 = vadd.s32 336, %v4324_v50  ;;  %v2586_v22 = vmax.f32 %v2502_v2, %v2503_v37  ;;  %v2113_v28 = vadd.f32 %v2067_v15, %v1598_v51  ;;  %v6515_v33 = vand.u32 31, %v6514_v44  ;;  %v6518_v44 = vld [vmem:[#allocation45_spill] sm:$0xff] }
 0x19b   :  { %vm5311_vm11 = vcmp.lt.s32.totalorder %v6511_v59, %v4810_v52  ;;  %v2245_v0 = vmax.f32 %v2181_v55, 0.0  ;;  %v2504_v10 = vsel %vm5236_vm9, %v2244_v6, 0.0  ;;  %v1553_v59 = vsel %vm1511_vm2, %v1468_v29, %v1469_v31  ;;  %v6522_v31 = vld [vmem:[#allocation4_spill] sm:$0xff] }
 0x19c   :  { %vm5323_vm12 = vcmp.lt.s32.totalorder %v6515_v33, %v4810_v52  ;;  %v1554_v15 = vsel %vm1511_vm2, %v1467_v45, %v1468_v29  ;;  %v2068_v2 = vsel %vm2026_vm3, %v1983_v60, %v1984_v57  ;;  %v2572_v55 = vmax.f32 %v5139_v58, %v2571_v25  ;;  %v5352_v29 = vpop.f32.mrf.mxu0 }
 0x19d   :  { %v2505_v51 = vsel %vm5255_vm10, %v2245_v0, 0.0  ;;  %v2587_v37 = vmax.f32 %v2586_v22, %v2504_v10  ;;  %v6519_v33 = vand.u32 31, %v6518_v44  ;;  %v1596_v6 = vadd.f32 %v1554_v15, %v6522_v31  ;;  %v6524_v10 = vld [vmem:[#allocation48_spill] sm:$0xff] }
 0x19e   :  { %v1597_v45 = vadd.f32 %v1553_v59, %v6523_v21  ;;  %v2069_v57 = vsel %vm2026_vm3, %v1982_v42, %v1983_v60  ;;  %v5356_v36 = vadd.s32 320, %v4324_v50  ;;  %v1471_v0 = vrot.slane %v5188_v18, 2  ;;  %v5368_v42 = vpop.f32.mrf.mxu1 }
 0x19f   :  { %vm5344_vm13 = vcmp.lt.s32.totalorder %v6519_v33, %v4810_v52  ;;  %v5358_v25 = vmax.f32 %v2587_v37, %v2505_v51  ;;  %v2111_v22 = vadd.f32 %v2069_v57, %v1596_v6  ;;  %v6525_v15 = vand.u32 31, %v6524_v10 }
 0x1a0   :  { %v5371_v60 = vadd.s32 328, %v4324_v50  ;;  %v2184_v59 = vadd.f32 %v4842_v48, %v2113_v28  ;;  %v2112_v44 = vadd.f32 %v2068_v2, %v1597_v45  ;;  %v1986_v51 = vrot.slane %v5196_v34, 3  ;;  %v5385_v34 = vpop.f32.mrf.mxu0 }
 0x1a1   :  { %vm5364_vm14 = vcmp.lt.s32.totalorder %v6525_v15, %v4810_v52  ;;  %v1474_v37 = vrot.slane %v5213_v13, 2  ;;  %v2573_v18 = vrot.slane %v2572_v55, 2  ;;  %v2182_v33 = vadd.f32 %v4842_v48, %v2111_v22  ;;  %v6528_v15 = vld [vmem:[#allocation6_spill] sm:$0xff] }
 0x1a2   :  { %v1473_v31 = vrot.slane %v5175_v43, 2  ;;  %v1551_v6 = vsel %vm1511_vm2, %v1470_v27, %v1471_v0  ;;  %v2580_v57 = vrot.slane %v5269_v56, 4  ;;  %v2183_v10 = vadd.f32 %v4842_v48, %v2112_v44  ;;  %v5391_v27 = vpop.f32.mrf.mxu1 }
 0x1a3   :  { %v1599_v58 = vadd.f32 %v1551_v6, %v6528_v15  ;;  %v2066_v28 = vsel %vm2026_vm3, %v1985_v39, %v1986_v51  ;;  %v2246_v13 = vmax.f32 %v2182_v33, 0.0  ;;  %v1988_v2 = vrot.slane %v5180_v54, 3 }
 0x1a4   :  { %v1548_v43 = vsel %vm1511_vm2, %v1473_v31, %v1474_v37  ;;  %v1989_v45 = vrot.slane %v5224_v9, 3  ;;  %v2248_v22 = vmax.f32 %v2184_v59, 0.0  ;;  %v2247_v53 = vmax.f32 %v2183_v10, 0.0  ;;  %v3842_v9 = vld [vmem:[%s6349_s4 + $0x10] sm:$0xff]   ;;  %v5410_v10 = vpop.f32.mrf.mxu0 }
 0x1a5   :  { %v2114_v44 = vadd.f32 %v2066_v28, %v1599_v58  ;;  %v1602_v6 = vadd.f32 %v1548_v43, %v6529_v14  ;;  %v2506_v39 = vsel %vm5311_vm11, %v2246_v13, 0.0  ;;  %v1472_v54 = vrot.slane %v5230_v61, 2  ;;  %3758 = vmatpush3.bf16.msra.mxu0 %v3842_v9 }
 0x1a6   :  { %v2063_v33 = vsel %vm2026_vm3, %v1988_v2, %v1989_v45  ;;  %v5400_v15 = vadd.s32 344, %v4324_v50  ;;  %v5405_v59 = vmax.f32 %v2572_v55, %v2573_v18  ;;  %v2507_v14 = vsel %vm5323_vm12, %v2247_v53, 0.0  ;;  %v6530_v55 = vld [vmem:[#allocation52_spill] sm:$0xff]  ;;  %v6534_v53 = vld [vmem:[#allocation53_spill] sm:$0xff]  ;;  %3759 = vmatprep.subr.bf16.mxu0 %v6406_v38 }
 0x1a7   :  { %v2185_v23 = vadd.f32 %v4842_v48, %v2114_v44  ;;  %v2117_v58 = vadd.f32 %v2063_v33, %v1602_v6  ;;  %v2581_v28 = vmax.f32 %v5269_v56, %v2580_v57  ;;  %v2595_v61 = vmax.f32 %v2506_v39, %v2507_v14  ;;  %v5431_v56 = vpop.f32.mrf.mxu1  ;;  %v6538_v57 = vld [vmem:[#allocation49_spill] sm:$0xff] }
 0x1a8   :  { %v1549_v13 = vsel %vm1511_vm2, %v1472_v54, %v1473_v31  ;;  %v1550_v43 = vsel %vm1511_vm2, %v1471_v0, %v1472_v54  ;;  %v6531_v18 = vand.u32 31, %v6530_v55  ;;  %v6535_v44 = vand.u32 31, %v6534_v53  ;;  %v6542_v54 = vld [vmem:[#allocation8_spill] sm:$0xff]  ;;  %v6543_v55 = vld [vmem:[#allocation9_spill] sm:$0xff] }
 0x1a9   :  { %v2508_v0 = vsel %vm5344_vm13, %v2248_v22, 0.0  ;;  %v2249_v31 = vmax.f32 %v2185_v23, 0.0  ;;  %v6539_v39 = vand.u32 31, %v6538_v57  ;;  %v1600_v14 = vadd.f32 %v1550_v43, %v6542_v54  ;;  %v6544_v54 = vld [vmem:[#allocation54_spill] sm:$0xff] }
 0x1aa   :  { %vm5420_vm15 = vcmp.lt.s32.totalorder %v6531_v18, %v4810_v52  ;;  %vm5427_vm1 = vcmp.lt.s32.totalorder %v6535_v44, %v4810_v52  ;;  %v1601_v18 = vadd.f32 %v1549_v13, %v6543_v55  ;;  %v2596_v53 = vmax.f32 %v2595_v61, %v2508_v0 }
 0x1ab   :  { %vm5438_vm4 = vcmp.lt.s32.totalorder %v6539_v39, %v4810_v52  ;;  %v1987_v9 = vrot.slane %v5240_v19, 3  ;;  %v2575_v23 = vrot.slane %v5405_v59, 1  ;;  %v2509_v44 = vsel %vm5364_vm14, %v2249_v31, 0.0  ;;  %v5452_v39 = vpop.f32.mrf.mxu0 }
 0x1ac   :  { %v1475_v57 = vrot.slane %v5275_v11, 2  ;;  %v5455_v43 = vmax.f32 %v2596_v53, %v2509_v44  ;;  %v2188_v61 = vadd.f32 %v4842_v48, %v2117_v58  ;;  %v6545_v21 = vand.u32 31, %v6544_v54  ;;  %v5469_v11 = vpop.f32.mrf.mxu1 }
 0x1ad   :  { %v2064_v19 = vsel %vm2026_vm3, %v1987_v9, %v1988_v2  ;;  %v2065_v0 = vsel %vm2026_vm3, %v1986_v51, %v1987_v9  ;;  %v2582_v55 = vrot.slane %v2581_v28, 2  ;;  %v2589_v2 = vrot.slane %v5358_v25, 4  ;;  %v6548_v51 = vld [vmem:[#allocation10_spill] sm:$0xff] }
 0x1ae   :  { %vm5465_vm5 = vcmp.lt.s32.totalorder %v6545_v21, %v4810_v52  ;;  %v2115_v53 = vadd.f32 %v2065_v0, %v1600_v14  ;;  %v2116_v44 = vadd.f32 %v2064_v19, %v1601_v18  ;;  %v1547_v58 = vsel %vm1511_vm2, %v1474_v37, %v1475_v57  ;;  %v5481_v18 = vpop.f32.mrf.mxu0 }
 0x1af   :  { %v1477_v13 = vrot.slane %v5259_v24, 2  ;;  %v1603_v9 = vadd.f32 %v1547_v58, %v6548_v51  ;;  %v1990_v54 = vrot.slane %v5280_v1, 3  ;;  %v1478_v41 = vrot.slane %v5287_v47, 2  ;;  %v5487_v58 = vpop.f32.mrf.mxu1 }
 0x1b0   :  { %v2186_v21 = vadd.f32 %v4842_v48, %v2115_v53  ;;  %v2187_v22 = vadd.f32 %v4842_v48, %v2116_v44  ;;  %v1993_v14 = vrot.slane %v5289_v3, 3  ;;  %v2252_v19 = vmax.f32 %v2188_v61, 0.0  ;;  %v6549_v61 = vld [vmem:[#allocation11_spill] sm:$0xff] }
 0x1b1   :  { %v1992_v37 = vrot.slane %v5264_v32, 3  ;;  %v2062_v24 = vsel %vm2026_vm3, %v1989_v45, %v1990_v54  ;;  %v1476_v0 = vrot.slane %v5315_v17, 2  ;;  %v1544_v47 = vsel %vm1511_vm2, %v1477_v13, %v1478_v41 }
 0x1b2   :  { %v2250_v1 = vmax.f32 %v2186_v21, 0.0  ;;  %v2251_v53 = vmax.f32 %v2187_v22, 0.0  ;;  %v2118_v51 = vadd.f32 %v2062_v24, %v1603_v9  ;;  %v5491_v44 = vmax.f32 %v2581_v28, %v2582_v55  ;;  %v5513_v9 = vpop.f32.mrf.mxu0 }
 0x1b3   :  { %v2590_v35 = vmax.f32 %v5358_v25, %v2589_v2  ;;  %v1606_v30 = vadd.f32 %v1544_v47, %v6549_v61  ;;  %v2059_v32 = vsel %vm2026_vm3, %v1992_v37, %v1993_v14  ;;  %v1545_v28 = vsel %vm1511_vm2, %v1476_v0, %v1477_v13  ;;  %v6550_v25 = vld [vmem:[#allocation59_spill] sm:$0xff]  ;;  %v6558_v61 = vld [vmem:[#allocation12_spill] sm:$0xff] }
 0x1b4   :  { %v2510_v17 = vsel %vm5420_vm15, %v2250_v1, 0.0  ;;  %v2511_v45 = vsel %vm5427_vm1, %v2251_v53, 0.0  ;;  %v2189_v22 = vadd.f32 %v4842_v48, %v2118_v51  ;;  %v6551_v55 = vand.u32 31, %v6550_v25  ;;  %v6554_v1 = vld [vmem:[#allocation60_spill] sm:$0xff]  ;;  %v5526_v51 = vpop.f32.mrf.mxu1  ;;  %v3844_v53 = vld [vmem:[%s6349_s4] sm:$0xff]  }
 0x1b5   :  { %v2512_v49 = vsel %vm5438_vm4, %v2252_v19, 0.0  ;;  %v2604_v21 = vmax.f32 %v2510_v17, %v2511_v45  ;;  %v2121_v6 = vadd.f32 %v2059_v32, %v1606_v30  ;;  %v1546_v24 = vsel %vm1511_vm2, %v1475_v57, %v1476_v0  ;;  %v6560_v32 = vld [vmem:[#allocation55_spill] sm:$0xff] }
 0x1b6   :  { %vm5509_vm6 = vcmp.lt.s32.totalorder %v6551_v55, %v4810_v52  ;;  %v6555_v13 = vand.u32 31, %v6554_v1  ;;  %v2253_v47 = vmax.f32 %v2189_v22, 0.0  ;;  %v1604_v25 = vadd.f32 %v1546_v24, %v6558_v61  ;;  %v6559_v55 = vld [vmem:[#allocation13_spill] sm:$0xff]  ;;  %v5555_v61 = vpop.f32.mrf.mxu1 }
 0x1b7   :  { %v1605_v33 = vadd.f32 %v1545_v28, %v6559_v55  ;;  %v1991_v19 = vrot.slane %v5327_v20, 3  ;;  %v5532_v30 = vmax.f32 %v5405_v59, %v2575_v23  ;;  %v2591_v57 = vrot.slane %v2590_v35, 2 }
 0x1b8   :  { %vm5522_vm7 = vcmp.lt.s32.totalorder %v6555_v13, %v4810_v52  ;;  %v2605_v0 = vmax.f32 %v2604_v21, %v2512_v49  ;;  %v6561_v17 = vand.u32 31, %v6560_v32  ;;  %v5542_v22 = vadd.s32 368, %v4324_v50  ;;  %v5551_v49 = vpop.f32.mrf.mxu0 }
 0x1b9   :  { %v2513_v28 = vsel %vm5465_vm5, %v2253_v47, 0.0  ;;  %v2192_v20 = vadd.f32 %v4842_v48, %v2121_v6  ;;  %v2060_v59 = vsel %vm2026_vm3, %v1991_v19, %v1992_v37  ;;  %v2061_v23 = vsel %vm2026_vm3, %v1990_v54, %v1991_v19  ;;  %v6564_v37 = vld [vmem:[#allocation62_spill] sm:$0xff] }
 0x1ba   :  { %vm5537_vm8 = vcmp.lt.s32.totalorder %v6561_v17, %v4810_v52  ;;  %v2606_v24 = vmax.f32 %v2605_v0, %v2513_v28  ;;  %v2119_v1 = vadd.f32 %v2061_v23, %v1604_v25  ;;  %v1481_v13 = vrot.slane %v5352_v29, 2  ;;  %v5579_v28 = vpop.f32.mrf.mxu0 }
 0x1bb   :  { %v2120_v31 = vadd.f32 %v2060_v59, %v1605_v33  ;;  %v1479_v47 = vrot.slane %v5385_v34, 2  ;;  %v1994_v6 = vrot.slane %v5391_v27, 3  ;;  %v6565_v55 = vand.u32 31, %v6564_v37  ;;  %v6568_v59 = vld [vmem:[#allocation14_spill] sm:$0xff] }
 0x1bc   :  { %v6377_v19 = vrot.slane %v5410_v10, 2  ;;  %v5567_v0 = vmax.f32 %v2590_v35, %v2591_v57  ;;  %v2598_v29 = vrot.slane %v5455_v43, 4  ;;  %v2190_v25 = vadd.f32 %v4842_v48, %v2119_v1 }
 0x1bd   :  { %vm5562_vm9 = vcmp.lt.s32.totalorder %v6565_v55, %v4810_v52  ;;  %v1996_v33 = vrot.slane %v5368_v42, 3  ;;  %v2256_v34 = vmax.f32 %v2192_v20, 0.0  ;;  %v2191_v27 = vadd.f32 %v4842_v48, %v2120_v31  ;;  %v6569_v20 = vld [vmem:[#allocation63_spill] sm:$0xff]  ;;  %v5593_v31 = vpop.f32.mrf.mxu1 }
 0x1be   :  { %v1543_v32 = vsel %vm1511_vm2, %v1478_v41, %v1479_v47  ;;  %v1540_v17 = vsel %vm1511_vm2, %v1481_v13, %v6377_v19  ;;  %v2607_v35 = vrot.slane %v2606_v24, 4  ;;  %v2254_v57 = vmax.f32 %v2190_v25, 0.0  ;;  %v6573_v55 = vld [vmem:[#allocation15_spill] sm:$0xff] }
 0x1bf   :  { %v1607_v23 = vadd.f32 %v1543_v32, %v6568_v59  ;;  %v2058_v42 = vsel %vm2026_vm3, %v1993_v14, %v1994_v6  ;;  %v6570_v1 = vand.u32 31, %v6569_v20  ;;  %v2255_v37 = vmax.f32 %v2191_v27, 0.0 }
 0x1c0   :  { %v1610_v21 = vadd.f32 %v1540_v17, %v6573_v55  ;;  %v1997_v25 = vrot.slane %v5431_v56, 3  ;;  %v1480_v32 = vrot.slane %v5452_v39, 2  ;;  %v2599_v3 = vmax.f32 %v5455_v43, %v2598_v29  ;;  %v3843_v39 = vld [vmem:[%s6349_s4 + $0x8] sm:$0xff]   ;;  %v5630_v17 = vpop.f32.mrf.mxu1 }
 0x1c1   :  { %vm5589_vm10 = vcmp.lt.s32.totalorder %v6570_v1, %v4810_v52  ;;  %v2514_v14 = vsel %vm5509_vm6, %v2254_v57, 0.0  ;;  %v2122_v59 = vadd.f32 %v2058_v42, %v1607_v23  ;;  %v1995_v20 = vrot.slane %v5469_v11, 3  ;;  %3760 = vmatpush3.bf16.msra.mxu0 %v3843_v39  ;;  %v6579_v57 = vld [vmem:[#allocation16_spill] sm:$0xff] }
 0x1c2   :  { %v6574_v1 = vand.u32 31, %v4860_v62  ;;  %vm5612_vm12 = vcmp.lt.s32.totalorder %v2386_v8, %v4810_v52  ;;  %v2515_v43 = vsel %vm5522_vm7, %v2255_v37, 0.0  ;;  %v2055_v62 = vsel %vm2026_vm3, %v1996_v33, %v1997_v25  ;;  %3761 = vmatprep.subr.bf16.mxu0 %v6406_v38 }
 0x1c3   :  { %v1541_v11 = vsel %vm1511_vm2, %v1480_v32, %v1481_v13  ;;  %v1542_v5 = vsel %vm1511_vm2, %v1479_v47, %v1480_v32  ;;  %v2608_v8 = vmax.f32 %v2606_v24, %v2607_v35  ;;  %v2613_v2 = vmax.f32 %v2514_v14, %v2515_v43  ;;  %v6580_v47 = vld [vmem:[#allocation17_spill] sm:$0xff] }
 0x1c4   :  { %vm5605_vm11 = vcmp.lt.s32.totalorder %v6574_v1, %v4810_v52  ;;  %v5627_v52 = vpop.f32.mrf.mxu0  ;;  %v2193_v29 = vadd.f32 %v4842_v48, %v2122_v59  ;;  %v2125_v27 = vadd.f32 %v2055_v62, %v1610_v21  ;;  %v2516_v13 = vsel %vm5537_vm8, %v2256_v34, 0.0  ;;  %v5663_v62 = vpop.f32.mrf.mxu1 }
 0x1c5   :  { %v1608_v23 = vadd.f32 %v1542_v5, %v6579_v57  ;;  %v1609_v42 = vadd.f32 %v1541_v11, %v6580_v47  ;;  %v2056_v24 = vsel %vm2026_vm3, %v1995_v20, %v1996_v33  ;;  %v2614_v35 = vmax.f32 %v2613_v2, %v2516_v13  ;;  %3762 = vmatpush3.bf16.msra.mxu0 %v3844_v53 }
 0x1c6   :  { %v2257_v21 = vmax.f32 %v2193_v29, 0.0  ;;  %v2196_v37 = vadd.f32 %v4842_v48, %v2125_v27  ;;  %v2057_v55 = vsel %vm2026_vm3, %v1994_v6, %v1995_v20  ;;  %v2593_v32 = vrot.slane %v5567_v0, 1  ;;  %v5646_v59 = vpop.f32.mrf.mxu0  ;;  %v5654_v48 = vld [vmem:[%s6350_s3] ss:$0 sm:$0xff] }
 0x1c7   :  { %v2600_v45 = vrot.slane %v2599_v3, 2  ;;  %v2123_v34 = vadd.f32 %v2057_v55, %v1608_v23  ;;  %v2124_v14 = vadd.f32 %v2056_v24, %v1609_v42  ;;  %v2609_v1 = vrot.slane %v2608_v8, 2  ;;  %v6585_v42 = vld [vmem:[#allocation18_spill] sm:$0xff] }
 0x1c8   :  { %v2517_v33 = vsel %vm5562_vm9, %v2257_v21, 0.0  ;;  %v2260_v39 = vmax.f32 %v2196_v37, 0.0  ;;  %v1483_v43 = vrot.slane %v5513_v9, 2  ;;  %v6581_v6 = vand.u32 31, %v5137_v4  ;;  %v5668_v9 = vld [vmem:[%s6351_s2] ss:$0 sm:$0xff]  ;;  %v5683_v21 = vpop.f32.mrf.mxu0 }
 0x1c9   :  { %v2615_v54 = vmax.f32 %v2614_v35, %v2517_v33  ;;  %v2194_v11 = vadd.f32 %v5668_v9, %v2123_v34  ;;  %v2195_v5 = vadd.f32 %v5668_v9, %v2124_v14  ;;  %v1998_v2 = vrot.slane %v5526_v51, 3  ;;  %v5697_v35 = vpop.f32.mrf.mxu1  ;;  %v3845_v37 = vld [vmem:[%s6352_s6 + $0x38] sm:$0xff]  }
 0x1ca   :  { %vm5659_vm13 = vcmp.lt.s32.totalorder %v6581_v6, %v5654_v48  ;;  %v1485_v4 = vrot.slane %v5481_v18, 2  ;;  %v2000_v29 = vrot.slane %v5487_v58, 3  ;;  %v6584_v27 = vrot.slane %v5410_v10, 2  ;;  %3768 = vmatpush3.bf16.msra.mxu1 %v3845_v37  ;;  %v6598_v37 = vld [vmem:[#allocation21_spill] sm:$0xff] }
 0x1cb   :  { %v1486_v13 = vrot.slane %v5551_v49, 2  ;;  %v2520_v57 = vsel %vm5589_vm10, %v2260_v39, 0.0  ;;  %v2258_v23 = vmax.f32 %v2194_v11, 0.0  ;;  %v2259_v47 = vmax.f32 %v2195_v5, 0.0  ;;  %v6587_v39 = vld [vmem:[#allocation19_spill] sm:$0xff]  ;;  %3769 = vmatprep.subr.bf16.mxu1 %v6406_v38 }
 0x1cc   :  { %v1539_v53 = vsel %vm1511_vm2, %v6584_v27, %v1483_v43  ;;  %v6586_v18 = vrot.slane %v5491_v44, 1  ;;  %v2054_v10 = vsel %vm2026_vm3, %v1997_v25, %v1998_v2  ;;  %v2001_v41 = vrot.slane %v5555_v61, 3 }
 0x1cd   :  { %v1611_v24 = vadd.f32 %v1539_v53, %v6585_v42  ;;  %v1536_v51 = vsel %vm1511_vm2, %v1485_v4, %v1486_v13  ;;  %v5702_v55 = vmax.f32 %v2599_v3, %v2600_v45  ;;  %v2519_v25 = vsel %vm5612_vm12, %v2259_v47, 0.0 }
 0x1ce   :  { %v5688_v58 = vmax.f32 %v5491_v44, %v6586_v18  ;;  %v2518_v44 = vsel %vm5605_vm11, %v2258_v23, 0.0  ;;  %v5708_v14 = vmax.f32 %v2608_v8, %v2609_v1  ;;  %v1614_v6 = vadd.f32 %v1536_v51, %v6587_v39  ;;  %v6597_v51 = vld [vmem:[#allocation20_spill] sm:$0xff] }
 0x1cf   :  { %v2126_v34 = vadd.f32 %v2054_v10, %v1611_v24  ;;  %v2622_v33 = vmax.f32 %v2518_v44, %v2519_v25  ;;  %v6588_v11 = vand.u32 31, %v5144_v16  ;;  %v1484_v3 = vrot.slane %v5579_v28, 2  ;;  %v3846_v16 = vld [vmem:[%s6352_s6 + $0x30] sm:$0xff]   ;;  %v5749_v24 = vpop.f32.mrf.mxu1 }
 0x1d0   :  { %v6591_v19 = vand.u32 31, %v5244_v46  ;;  %v6594_v8 = vand.u32 31, %v5267_v7  ;;  %v2616_v28 = vrot.slane %v2615_v54, 4  ;;  %v2051_v46 = vsel %vm2026_vm3, %v2000_v29, %v2001_v41  ;;  %v5742_v7 = vpop.f32.mrf.mxu0  ;;  %3770 = vmatpush3.bf16.msra.mxu1 %v3846_v16 }
 0x1d1   :  { %vm5714_vm14 = vcmp.lt.s32.totalorder %v6588_v11, %v5654_v48  ;;  %v2197_v1 = vadd.f32 %v5668_v9, %v2126_v34  ;;  %v1999_v27 = vrot.slane %v5593_v31, 3  ;;  %v2623_v53 = vmax.f32 %v2622_v33, %v2520_v57  ;;  %3771 = vmatprep.subr.bf16.mxu1 %v6406_v38  ;;  %v5782_v20 = vpop.f32.mrf.mxu1 }
 0x1d2   :  { %vm5722_vm15 = vcmp.lt.s32.totalorder %v6591_v19, %v5654_v48  ;;  %vm5729_vm1 = vcmp.lt.s32.totalorder %v6594_v8, %v5654_v48  ;;  %v2129_v23 = vadd.f32 %v2051_v46, %v1614_v6  ;;  %v1537_v47 = vsel %vm1511_vm2, %v1484_v3, %v1485_v4  ;;  %v5768_v6 = vpop.f32.mrf.mxu0 }
 0x1d3   :  { %v1538_v42 = vsel %vm1511_vm2, %v1483_v43, %v1484_v3  ;;  %v5752_v18 = vmax.f32 %v5567_v0, %v2593_v32  ;;  %v2261_v10 = vmax.f32 %v2197_v1, 0.0  ;;  %v1613_v44 = vadd.f32 %v1537_v47, %v6598_v37  ;;  %v3847_v0 = vld [vmem:[%s6352_s6 + $0x28] sm:$0xff]   ;;  %v6602_v47 = vld [vmem:[#allocation22_spill] sm:$0xff] }
 0x1d4   :  { %v1612_v31 = vadd.f32 %v1538_v42, %v6597_v51  ;;  %v2602_v25 = vrot.slane %v5702_v55, 1  ;;  %v2200_v57 = vadd.f32 %v5668_v9, %v2129_v23  ;;  %v2052_v4 = vsel %vm2026_vm3, %v1999_v27, %v2000_v29  ;;  %3772 = vmatpush3.bf16.msra.mxu1 %v3847_v0  ;;  %v6609_v0 = vld [vmem:[#allocation23_spill] sm:$0xff] }
 0x1d5   :  { %v2053_v43 = vsel %vm2026_vm3, %v1998_v2, %v1999_v27  ;;  %v2611_v32 = vrot.slane %v5708_v14, 1  ;;  %v2521_v34 = vsel %vm5659_vm13, %v2261_v10, 0.0  ;;  %v2128_v39 = vadd.f32 %v2052_v4, %v1613_v44  ;;  %v3848_v27 = vld [vmem:[%s6352_s6 + $0x20] sm:$0xff]   ;;  %3773 = vmatprep.subr.bf16.mxu1 %v6406_v38 }
 0x1d6   :  { %v2127_v33 = vadd.f32 %v2053_v43, %v1612_v31  ;;  %v5771_v29 = vmax.f32 %v2615_v54, %v2616_v28  ;;  %v2624_v11 = vmax.f32 %v2623_v53, %v2521_v34  ;;  %v1487_v2 = vrot.slane %v5646_v59, 2  ;;  %v5817_v31 = vpop.f32.mrf.mxu1 }
 0x1d7   :  { %v2002_v3 = vrot.slane %v5663_v62, 3  ;;  %v6599_v19 = vand.u32 31, %v5293_v12  ;;  %v2264_v16 = vmax.f32 %v2200_v57, 0.0  ;;  %v2199_v54 = vadd.f32 %v5668_v9, %v2128_v39 }
 0x1d8   :  { %v2198_v1 = vadd.f32 %v5668_v9, %v2127_v33  ;;  %v1490_v28 = vrot.slane %v5683_v21, 2  ;;  %v2625_v46 = vrot.slane %v2624_v11, 4  ;;  %v1489_v59 = vrot.slane %v5627_v52, 2  ;;  %3774 = vmatpush3.bf16.msra.mxu1 %v3848_v27  ;;  %v5855_v27 = vpop.f32.mrf.mxu1 }
 0x1d9   :  { %vm5778_vm4 = vcmp.lt.s32.totalorder %v6599_v19, %v5654_v48  ;;  %v2004_v62 = vrot.slane %v5630_v17, 3  ;;  %v1535_v12 = vsel %vm1511_vm2, %v1486_v13, %v1487_v2  ;;  %v2263_v23 = vmax.f32 %v2199_v54, 0.0  ;;  %v5808_v13 = vpop.f32.mrf.mxu0  ;;  %3775 = vmatprep.subr.bf16.mxu1 %v6406_v38 }
 0x1da   :  { %v2262_v53 = vmax.f32 %v2198_v1, 0.0  ;;  %v1615_v42 = vadd.f32 %v1535_v12, %v6602_v47  ;;  %v2050_v52 = vsel %vm2026_vm3, %v2001_v41, %v2002_v3  ;;  %v6603_v49 = vand.u32 31, %v5318_v40 }
 0x1db   :  { %v2626_v10 = vmax.f32 %v2624_v11, %v2625_v46  ;;  %v1532_v61 = vsel %vm1511_vm2, %v1489_v59, %v1490_v28  ;;  %v2005_v51 = vrot.slane %v5697_v35, 3  ;;  %v1488_v41 = vrot.slane %v5742_v7, 2  ;;  %v6613_v46 = vld [vmem:[#allocation24_spill] sm:$0xff] }
 0x1dc   :  { %vm5804_vm5 = vcmp.lt.s32.totalorder %v6603_v49, %v5654_v48  ;;  %v2524_v40 = vsel %vm5714_vm14, %v2264_v16, 0.0  ;;  %v2522_v37 = vsel %vm5722_vm15, %v2262_v53, 0.0  ;;  %v2523_v44 = vsel %vm5729_vm1, %v2263_v23, 0.0  ;;  %v6614_v23 = vld [vmem:[#allocation25_spill] sm:$0xff] }
 0x1dd   :  { %v2130_v57 = vadd.f32 %v2050_v52, %v1615_v42  ;;  %v6606_v4 = vand.u32 31, %v5356_v36  ;;  %v2627_v35 = vrot.slane %v2626_v10, 2  ;;  %v2631_v7 = vmax.f32 %v2522_v37, %v2523_v44  ;;  %v3849_v36 = vld [vmem:[%s6352_s6 + $0x18] sm:$0xff]  }
 0x1de   :  { %v1618_v34 = vadd.f32 %v1532_v61, %v6609_v0  ;;  %v2047_v5 = vsel %vm2026_vm3, %v2004_v62, %v2005_v51  ;;  %v6610_v56 = vand.u32 31, %v5371_v60  ;;  %v1533_v39 = vsel %vm1511_vm2, %v1488_v41, %v1489_v59  ;;  %v5851_v60 = vpop.f32.mrf.mxu0  ;;  %3776 = vmatpush3.bf16.msra.mxu1 %v3849_v36  ;;  %v6618_v36 = vld [vmem:[#allocation26_spill] sm:$0xff] }
 0x1df   :  { %vm5828_vm6 = vcmp.lt.s32.totalorder %v6606_v4, %v5654_v48  ;;  %v2201_v33 = vadd.f32 %v5668_v9, %v2130_v57  ;;  %v1534_v11 = vsel %vm1511_vm2, %v1487_v2, %v1488_v41  ;;  %v2003_v19 = vrot.slane %v5749_v24, 3  ;;  %3777 = vmatprep.subr.bf16.mxu1 %v6406_v38  ;;  %v1886_v4 = vpop.f32.mrf.mxu1 }
 0x1e0   :  { %vm5838_vm7 = vcmp.lt.s32.totalorder %v6610_v56, %v5654_v48  ;;  %v2628_v16 = vmax.f32 %v2626_v10, %v2627_v35  ;;  %v2632_v1 = vmax.f32 %v2631_v7, %v2524_v40  ;;  %v2133_v54 = vadd.f32 %v2047_v5, %v1618_v34  ;;  %v1371_v37 = vpop.f32.mrf.mxu0 }
 0x1e1   :  { %v1616_v12 = vadd.f32 %v1534_v11, %v6613_v46  ;;  %v2265_v53 = vmax.f32 %v2201_v33, 0.0  ;;  %v1617_v47 = vadd.f32 %v1533_v39, %v6614_v23  ;;  %v2048_v59 = vsel %vm2026_vm3, %v2003_v19, %v2004_v62 }
 0x1e2   :  { %v2049_v24 = vsel %vm2026_vm3, %v2002_v3, %v2003_v19  ;;  %v2629_v2 = vrot.slane %v2628_v16, 1  ;;  %v2204_v42 = vadd.f32 %v5668_v9, %v2133_v54  ;;  %v1493_v49 = vrot.slane %v5768_v6, 2  ;;  %v6619_v19 = vld [vmem:[#allocation27_spill] sm:$0xff] }
 0x1e3   :  { %v2131_v52 = vadd.f32 %v2049_v24, %v1616_v12  ;;  %v2525_v10 = vsel %vm5778_vm4, %v2265_v53, 0.0  ;;  %v2132_v61 = vadd.f32 %v2048_v59, %v1617_v47  ;;  %v2008_v41 = vrot.slane %v5782_v20, 3 }
 0x1e4   :  { %v1491_v40 = vrot.slane %v5808_v13, 2  ;;  %v5869_v62 = vmax.f32 %v2628_v16, %v2629_v2  ;;  %v2633_v3 = vmax.f32 %v2632_v1, %v2525_v10  ;;  %v2268_v44 = vmax.f32 %v2204_v42, 0.0  ;;  %v5904_v1 = vpop.f32.mrf.mxu1 }
 0x1e5   :  { %v2202_v57 = vadd.f32 %v5668_v9, %v2131_v52  ;;  %v6615_v6 = vand.u32 31, %v5400_v15  ;;  %v2203_v20 = vadd.f32 %v5668_v9, %v2132_v61  ;;  %v2006_v35 = vrot.slane %v5817_v31, 3  ;;  %v5897_v31 = vpop.f32.mrf.mxu0 }
 0x1e6   :  { %v1531_v13 = vsel %vm1511_vm2, %v1490_v28, %v1491_v40  ;;  %v1494_v7 = vrot.slane %v5851_v60, 2  ;;  %v2702_v0 = vpack.c.bf16 %v5869_v62, %v5869_v62  ;;  %v2634_v15 = vrot.slane %v2633_v3, 4  ;;  %v5923_v61 = vpop.f32.mrf.mxu1 }
 0x1e7   :  { %vm5875_vm8 = vcmp.lt.s32.totalorder %v6615_v6, %v5654_v48  ;;  %v2528_v34 = vsel %vm5804_vm5, %v2268_v44, 0.0  ;;  %v2266_v5 = vmax.f32 %v2202_v57, 0.0  ;;  %v2267_v56 = vmax.f32 %v2203_v20, 0.0  ;;  %v5919_v42 = vpop.f32.mrf.mxu0  ;;  %v6622_v44 = vld [vmem:[#allocation29_spill] sm:$0xff] }
 0x1e8   :  { %v1619_v33 = vadd.f32 %v1531_v13, %v6618_v36  ;;  %v2046_v21 = vsel %vm2026_vm3, %v2005_v51, %v2006_v35  ;;  %v1528_v28 = vsel %vm1511_vm2, %v1493_v49, %v1494_v7  ;;  %v5899_v39 = vunpack.c.l.b16 %v2702_v0  ;;  %v6623_v13 = vld [vmem:[#allocation28_spill] sm:$0xff] }
 0x1e9   :  { %v2635_v11 = vmax.f32 %v2633_v3, %v2634_v15  ;;  %v2526_v17 = vsel %vm5828_vm6, %v2266_v5, 0.0  ;;  %v1622_v16 = vadd.f32 %v1528_v28, %v6619_v19  ;;  %v2527_v51 = vsel %vm5838_vm7, %v2267_v56, 0.0  ;;  %v5937_v56 = vpop.f32.mrf.mxu0  ;;  %v5939_v28 = vpop.f32.mrf.mxu1 }
 0x1ea   :  { %v2134_v54 = vadd.f32 %v2046_v21, %v1619_v33  ;;  %v2009_v46 = vrot.slane %v5855_v27, 3  ;;  %v2399_v12 = vand.u32 31, %v5542_v22  ;;  %v2640_v23 = vmax.f32 %v2526_v17, %v2527_v51 }
 0x1eb   :  { %v2636_v53 = vrot.slane %v2635_v11, 2  ;;  %v1492_v47 = vrot.slane %v1371_v37, 2  ;;  %v2007_v59 = vrot.slane %v1886_v4, 3  ;;  %v2333_v45 = vadd.s32 352, %v4324_v50 }
 0x1ec   :  { %v2205_v24 = vadd.f32 %v5668_v9, %v2134_v54  ;;  %v2043_v43 = vsel %vm2026_vm3, %v2008_v41, %v2009_v46  ;;  %vm5914_vm9 = vcmp.lt.s32.totalorder %v2399_v12, %v5654_v48  ;;  %v2641_v22 = vmax.f32 %v2640_v23, %v2528_v34 }
 0x1ed   :  { %v2637_v27 = vmax.f32 %v2635_v11, %v2636_v53  ;;  %v2137_v52 = vadd.f32 %v2043_v43, %v1622_v16  ;;  %v1529_v10 = vsel %vm1511_vm2, %v1492_v47, %v1493_v49  ;;  %v1530_v3 = vsel %vm1511_vm2, %v1491_v40, %v1492_v47  ;;  %v1387_v47 = vpop.f32.mrf.mxu0 }
 0x1ee   :  { %v2269_v37 = vmax.f32 %v2205_v24, 0.0  ;;  %v1621_v57 = vadd.f32 %v1529_v10, %v6622_v44  ;;  %v2044_v6 = vsel %vm2026_vm3, %v2007_v59, %v2008_v41  ;;  %v1620_v0 = vadd.f32 %v1530_v3, %v6623_v13 }
 0x1ef   :  { %v2638_v4 = vrot.slane %v2637_v27, 1  ;;  %v2208_v20 = vadd.f32 %v5668_v9, %v2137_v52  ;;  %v2045_v15 = vsel %vm2026_vm3, %v2006_v35, %v2007_v59  ;;  %v2334_v5 = vadd.s32 360, %v4324_v50 }
 0x1f0   :  { %v2529_v49 = vsel %vm5875_vm8, %v2269_v37, 0.0  ;;  %v2136_v34 = vadd.f32 %v2044_v6, %v1621_v57  ;;  %v2397_v40 = vand.u32 31, %v2333_v45  ;;  %v2135_v21 = vadd.f32 %v2045_v15, %v1620_v0  ;;  %v6626_v37 = vld [vmem:[#allocation30_spill] sm:$0xff]  ;;  %v5976_v57 = vpop.f32.mrf.mxu0 }
 0x1f1   :  { %v2639_v36 = vmax.f32 %v2637_v27, %v2638_v4  ;;  %v2642_v33 = vmax.f32 %v2641_v22, %v2529_v49  ;;  %v2272_v41 = vmax.f32 %v2208_v20, 0.0  ;;  %v2398_v17 = vand.u32 31, %v2334_v5  ;;  %v6627_v4 = vld [vmem:[#allocation31_spill] sm:$0xff] }
 0x1f2   :  { %v2207_v11 = vadd.f32 %v5668_v9, %v2136_v34  ;;  %vm5943_vm10 = vcmp.lt.s32.totalorder %v2397_v40, %v5654_v48  ;;  %v1497_v8 = vrot.slane %v5897_v31, 2  ;;  %v2206_v12 = vadd.f32 %v5668_v9, %v2135_v21 }
 0x1f3   :  { %v2703_v19 = vpack.c.bf16 %v2639_v36, %v2639_v36  ;;  %v5950_v16 = vsel %vm2765_vm0, %v2639_v36, %v5869_v62  ;;  %v2643_v51 = vrot.slane %v2642_v33, 4  ;;  %v2532_v54 = vsel %vm5914_vm9, %v2272_v41, 0.0  ;;  %v1902_v62 = vpop.f32.mrf.mxu1 }
 0x1f4   :  { %v2271_v53 = vmax.f32 %v2207_v11, 0.0  ;;  %vm2467_vm11 = vcmp.lt.s32.totalorder %v2398_v17, %v5654_v48  ;;  %v2012_v23 = vrot.slane %v5904_v1, 3  ;;  %v1495_v31 = vrot.slane %v5919_v42, 2  ;;  %v5995_v17 = vpop.f32.mrf.mxu0 }
 0x1f5   :  { %v2758_v59 = vunpack.c.l.b16 %v2703_v19  ;;  %v2644_v24 = vmax.f32 %v2642_v33, %v2643_v51  ;;  %v2010_v43 = vrot.slane %v5923_v61, 3  ;;  %v2270_v45 = vmax.f32 %v2206_v12, 0.0  ;;  %v6630_v51 = vld [vmem:[#allocation33_spill] sm:$0xff] }
 0x1f6   :  { %v2531_v27 = vsel %vm2467_vm11, %v2271_v53, 0.0  ;;  %v2336_v2 = vadd.s32 376, %v4324_v50  ;;  %v1498_v22 = vrot.slane %v5937_v56, 2  ;;  %v1527_v1 = vsel %vm1511_vm2, %v1494_v7, %v1495_v31 }
 0x1f7   :  { %v2779_v52 = vsel %vm2765_vm0, %v2758_v59, %v5899_v39  ;;  %v2645_v10 = vrot.slane %v2644_v24, 2  ;;  %v2042_v42 = vsel %vm2026_vm3, %v2009_v46, %v2010_v43  ;;  %v2530_v61 = vsel %vm5943_vm10, %v2270_v45, 0.0  ;;  %v5980_v46 = vpop.f32.mrf.mxu1 }
 0x1f8   :  { %v1623_v3 = vadd.f32 %v1527_v1, %v6626_v37  ;;  %v2400_v44 = vand.u32 31, %v2336_v2  ;;  %v1524_v39 = vsel %vm1511_vm2, %v1497_v8, %v1498_v22  ;;  %v2649_v6 = vmax.f32 %v2530_v61, %v2531_v27  ;;  %v6021_v61 = vpop.f32.mrf.mxu0 }
 0x1f9   :  { %v2646_v60 = vmax.f32 %v2644_v24, %v2645_v10  ;;  %v1626_v7 = vadd.f32 %v1524_v39, %v6627_v4  ;;  %v2013_v20 = vrot.slane %v5939_v28, 3  ;;  %vm2767_vm0 = vcmask 1042434   ;;  %v6004_v53 = vpop.f32.mrf.mxu1  ;;  %v6633_v24 = vld [vmem:[#allocation32_spill] sm:$0xff] }
 0x1fa   :  { %v2138_v13 = vadd.f32 %v2042_v42, %v1623_v3  ;;  %vm5983_vm12 = vcmp.lt.s32.totalorder %v2400_v44, %v5654_v48  ;;  %v2339_v15 = vadd.s32 400, %v4324_v50  ;;  %v1496_v49 = vrot.slane %v1387_v47, 2 }
 0x1fb   :  { %v2647_v34 = vrot.slane %v2646_v60, 1  ;;  %v2650_v5 = vmax.f32 %v2649_v6, %v2532_v54  ;;  %v2039_v40 = vsel %vm2026_vm3, %v2012_v23, %v2013_v20  ;;  %v2011_v36 = vrot.slane %v1902_v62, 3 }
 0x1fc   :  { %v2209_v33 = vadd.f32 %v5668_v9, %v2138_v13  ;;  %v2141_v41 = vadd.f32 %v2039_v40, %v1626_v7  ;;  %v2403_v21 = vand.u32 31, %v2339_v15  ;;  %v1525_v11 = vsel %vm1511_vm2, %v1496_v49, %v1497_v8  ;;  %v1403_v40 = vpop.f32.mrf.mxu0 }
 0x1fd   :  { %v5997_v35 = vmax.f32 %v2646_v60, %v2647_v34  ;;  %v1526_v19 = vsel %vm1511_vm2, %v1495_v31, %v1496_v49  ;;  %v1625_v54 = vadd.f32 %v1525_v11, %v6630_v51  ;;  %v2040_v12 = vsel %vm2026_vm3, %v2011_v36, %v2012_v23  ;;  %v6024_v60 = vpop.f32.mrf.mxu1 }
 0x1fe   :  { %v2273_v47 = vmax.f32 %v2209_v33, 0.0  ;;  %v2212_v59 = vadd.f32 %v5668_v9, %v2141_v41  ;;  %vm6008_vm13 = vcmp.lt.s32.totalorder %v2403_v21, %v5654_v48  ;;  %v1624_v62 = vadd.f32 %v1526_v19, %v6633_v24  ;;  %v6056_v24 = vpop.f32.mrf.mxu0 }
 0x1ff   :  { %v2704_v31 = vpack.c.bf16 %v5997_v35, %v5997_v35  ;;  %v2041_v45 = vsel %vm2026_vm3, %v2010_v43, %v2011_v36  ;;  %v2140_v27 = vadd.f32 %v2040_v12, %v1625_v54  ;;  %v2337_v23 = vadd.s32 384, %v4324_v50 }
 0x200   :  { %v2533_v2 = vsel %vm5983_vm12, %v2273_v47, 0.0  ;;  %v2276_v10 = vmax.f32 %v2212_v59, 0.0  ;;  %v2139_v1 = vadd.f32 %v2041_v45, %v1624_v62  ;;  %v2338_v42 = vadd.s32 392, %v4324_v50  ;;  %v6634_v47 = vld [vmem:[#allocation34_spill] sm:$0xff]  ;;  %v6635_v45 = vld [vmem:[#allocation35_spill] sm:$0xff] }
 0x201   :  { %v2759_v37 = vunpack.c.l.b16 %v2704_v31  ;;  %v2651_v3 = vmax.f32 %v2650_v5, %v2533_v2  ;;  %v2211_v44 = vadd.f32 %v5668_v9, %v2140_v27  ;;  %v2401_v39 = vand.u32 31, %v2337_v23 }
 0x202   :  { %v2618_v43 = vrot.slane %v5771_v29, 2  ;;  %v2536_v6 = vsel %vm6008_vm13, %v2276_v10, 0.0  ;;  %v2210_v4 = vadd.f32 %v5668_v9, %v2139_v1  ;;  %v2402_v7 = vand.u32 31, %v2338_v42 }
 0x203   :  { %v6031_v13 = vsel %vm2767_vm0, %v2759_v37, %v2779_v52  ;;  %v2652_v0 = vrot.slane %v2651_v3, 4  ;;  %v2275_v15 = vmax.f32 %v2211_v44, 0.0  ;;  %vm2470_vm14 = vcmp.lt.s32.totalorder %v2401_v39, %v5654_v48  ;;  %v1918_v52 = vpop.f32.mrf.mxu1 }
 0x204   :  { %v2274_v49 = vmax.f32 %v2210_v4, 0.0  ;;  %vm2471_vm15 = vcmp.lt.s32.totalorder %v2402_v7, %v5654_v48  ;;  %v1501_v34 = vrot.slane %v5976_v57, 2  ;;  %v1499_v5 = vrot.slane %v5995_v17, 2 }
 0x205   :  { %v2653_v36 = vmax.f32 %v2651_v3, %v2652_v0  ;;  %v2535_v33 = vsel %vm2471_vm15, %v2275_v15, 0.0  ;;  %v2014_v41 = vrot.slane %v6004_v53, 3  ;;  %v2340_v21 = vadd.s32 408, %v4324_v50  ;;  %v6059_v23 = vpop.f32.mrf.mxu1  ;;  %v6636_v0 = vld [vmem:[#allocation36_spill] sm:$0xff] }
 0x206   :  { %v2534_v11 = vsel %vm2470_vm14, %v2274_v49, 0.0  ;;  %v1523_v19 = vsel %vm1511_vm2, %v1498_v22, %v1499_v5  ;;  %v1502_v51 = vrot.slane %v6021_v61, 2  ;;  %v2017_v57 = vrot.slane %v6024_v60, 3 }
 0x207   :  { %v2654_v54 = vrot.slane %v2653_v36, 2  ;;  %v2658_v17 = vmax.f32 %v2534_v11, %v2535_v33  ;;  %v2016_v12 = vrot.slane %v5980_v46, 3  ;;  %v1627_v59 = vadd.f32 %v1523_v19, %v6634_v47  ;;  %v6081_v49 = vpop.f32.mrf.mxu1 }
 0x208   :  { %v2038_v53 = vsel %vm2026_vm3, %v2013_v20, %v2014_v41  ;;  %v2404_v8 = vand.u32 31, %v2340_v21  ;;  %v1520_v56 = vsel %vm1511_vm2, %v1501_v34, %v1502_v51  ;;  %v2343_v22 = vadd.s32 432, %v4324_v50 }
 0x209   :  { %v2655_v62 = vmax.f32 %v2653_v36, %v2654_v54  ;;  %v2142_v31 = vadd.f32 %v2038_v53, %v1627_v59  ;;  %v2659_v46 = vmax.f32 %v2658_v17, %v2536_v6  ;;  %v1630_v27 = vadd.f32 %v1520_v56, %v6635_v45 }
 0x20a   :  { %vm2769_vm1 = vcmask 1043459   ;;  %v6062_v28 = vmax.f32 %v5771_v29, %v2618_v43  ;;  %v2035_v20 = vsel %vm2026_vm3, %v2016_v12, %v2017_v57  ;;  %v1500_v2 = vrot.slane %v1403_v40, 2  ;;  %v6075_v43 = vpop.f32.mrf.mxu0  ;;  %v6637_v40 = vld [vmem:[#allocation37_spill] sm:$0xff] }
 0x20b   :  { %v2015_v10 = vrot.slane %v1918_v52, 3  ;;  %v2656_v1 = vrot.slane %v2655_v62, 1  ;;  %v2213_v42 = vadd.f32 %v5668_v9, %v2142_v31  ;;  %v2145_v37 = vadd.f32 %v2035_v20, %v1630_v27 }
 0x20c   :  { %v2341_v3 = vadd.s32 416, %v4324_v50  ;;  %vm2473_vm4 = vcmp.lt.s32.totalorder %v2404_v8, %v5654_v48  ;;  %v2407_v44 = vand.u32 31, %v2343_v22  ;;  %v1521_v29 = vsel %vm1511_vm2, %v1500_v2, %v1501_v34  ;;  %v6100_v22 = vpop.f32.mrf.mxu1 }
 0x20d   :  { %v1522_v39 = vsel %vm1511_vm2, %v1499_v5, %v1500_v2  ;;  %v6077_v6 = vmax.f32 %v2655_v62, %v2656_v1  ;;  %v2277_v4 = vmax.f32 %v2213_v42, 0.0  ;;  %v2216_v7 = vadd.f32 %v5668_v9, %v2145_v37 }
 0x20e   :  { %v1628_v15 = vadd.f32 %v1522_v39, %v6636_v0  ;;  %v1629_v36 = vadd.f32 %v1521_v29, %v6637_v40  ;;  %v2037_v33 = vsel %vm2026_vm3, %v2014_v41, %v2015_v10  ;;  %v2342_v34 = vadd.s32 424, %v4324_v50  ;;  %v6096_v41 = vpop.f32.mrf.mxu0  ;;  %v1934_v39 = vpop.f32.mrf.mxu1 }
 0x20f   :  { %v2405_v21 = vand.u32 31, %v2341_v3  ;;  %v2705_v5 = vpack.c.bf16 %v6077_v6, %v6077_v6  ;;  %v2537_v52 = vsel %vm2473_vm4, %v2277_v4, 0.0  ;;  %v2036_v11 = vsel %vm2026_vm3, %v2015_v10, %v2016_v12 }
 0x210   :  { %v2143_v19 = vadd.f32 %v2037_v33, %v1628_v15  ;;  %v2660_v54 = vmax.f32 %v2659_v46, %v2537_v52  ;;  %vm6092_vm5 = vcmp.lt.s32.totalorder %v2407_v44, %v5654_v48  ;;  %v2144_v47 = vadd.f32 %v2036_v11, %v1629_v36  ;;  %v1419_v3 = vpop.f32.mrf.mxu0 }
 0x211   :  { %v2406_v59 = vand.u32 31, %v2342_v34  ;;  %v2760_v53 = vunpack.c.l.b16 %v2705_v5  ;;  %v2280_v8 = vmax.f32 %v2216_v7, 0.0  ;;  %vm2474_vm6 = vcmp.lt.s32.totalorder %v2405_v21, %v5654_v48  ;;  %v6642_v7 = vld [vmem:[#allocation38_spill] sm:$0xff]  ;;  %v6643_v34 = vld [vmem:[#allocation40_spill] sm:$0xff] }
 0x212   :  { %v2214_v56 = vadd.f32 %v5668_v9, %v2143_v19  ;;  %v2661_v12 = vrot.slane %v2660_v54, 4  ;;  %v2215_v62 = vadd.f32 %v5668_v9, %v2144_v47  ;;  %v1505_v46 = vrot.slane %v6056_v24, 2  ;;  %v6138_v60 = vpop.f32.mrf.mxu0  ;;  %v6144_v19 = vpop.f32.mrf.mxu1 }
 0x213   :  { %vm6104_vm7 = vcmp.lt.s32.totalorder %v2406_v59, %v5654_v48  ;;  %v6111_v45 = vsel %vm2769_vm1, %v2760_v53, %v6031_v13  ;;  %v1503_v20 = vrot.slane %v6075_v43, 2  ;;  %v2018_v2 = vrot.slane %v6081_v49, 3 }
 0x214   :  { %v2278_v27 = vmax.f32 %v2214_v56, 0.0  ;;  %v2662_v10 = vmax.f32 %v2660_v54, %v2661_v12  ;;  %v2279_v1 = vmax.f32 %v2215_v62, 0.0  ;;  %v2344_v42 = vadd.s32 440, %v4324_v50 }
 0x215   :  { %v1506_v37 = vrot.slane %v6096_v41, 2  ;;  %v2020_v29 = vrot.slane %v6059_v23, 3  ;;  %v1519_v13 = vsel %vm1511_vm2, %v1502_v51, %v1503_v20  ;;  %v2021_v24 = vrot.slane %v6100_v22, 3 }
 0x216   :  { %v2538_v44 = vsel %vm2474_vm6, %v2278_v27, 0.0  ;;  %v2663_v43 = vrot.slane %v2662_v10, 2  ;;  %v2539_v4 = vsel %vm6104_vm7, %v2279_v1, 0.0  ;;  %v1631_v0 = vadd.f32 %v1519_v13, %v6642_v7  ;;  %v6644_v27 = vld [vmem:[#allocation43_spill] sm:$0xff]  ;;  %v6157_v1 = vpop.f32.mrf.mxu0 }
 0x217   :  { %v2034_v15 = vsel %vm2026_vm3, %v2017_v57, %v2018_v2  ;;  %v2667_v23 = vmax.f32 %v2538_v44, %v2539_v4  ;;  %v2408_v49 = vand.u32 31, %v2344_v42  ;;  %v1516_v61 = vsel %vm1511_vm2, %v1505_v46, %v1506_v37  ;;  %v6645_v42 = vld [vmem:[#allocation44_spill] sm:$0xff] }
 0x218   :  { %v2347_v51 = vadd.s32 464, %v4324_v50  ;;  %v2664_v40 = vmax.f32 %v2662_v10, %v2663_v43  ;;  %v2540_v36 = vsel %vm6092_vm5, %v2280_v8, 0.0  ;;  %v2146_v33 = vadd.f32 %v2034_v15, %v1631_v0 }
 0x219   :  { %v1634_v21 = vadd.f32 %v1516_v61, %v6643_v34  ;;  %vm2771_vm8 = vcmask 1044484   ;;  %v2668_v57 = vmax.f32 %v2667_v23, %v2540_v36  ;;  %v2031_v5 = vsel %vm2026_vm3, %v2020_v29, %v2021_v24 }
 0x21a   :  { %v1504_v52 = vrot.slane %v1419_v3, 2  ;;  %v2019_v11 = vrot.slane %v1934_v39, 3  ;;  %v2665_v54 = vrot.slane %v2664_v40, 1  ;;  %v2217_v17 = vadd.f32 %v5668_v9, %v2146_v33  ;;  %v6163_v39 = vpop.f32.mrf.mxu1 }
 0x21b   :  { %v2149_v47 = vadd.f32 %v2031_v5, %v1634_v21  ;;  %v2345_v59 = vadd.s32 448, %v4324_v50  ;;  %vm2477_vm9 = vcmp.lt.s32.totalorder %v2408_v49, %v5654_v48  ;;  %v2411_v53 = vand.u32 31, %v2347_v51 }
 0x21c   :  { %v1517_v8 = vsel %vm1511_vm2, %v1504_v52, %v1505_v46  ;;  %v1518_v56 = vsel %vm1511_vm2, %v1503_v20, %v1504_v52  ;;  %v6153_v12 = vmax.f32 %v2664_v40, %v2665_v54  ;;  %v2281_v62 = vmax.f32 %v2217_v17, 0.0  ;;  %v3674_v40 = vpop.f32.mrf.mxu0  ;;  %v3746_v21 = vpop.f32.mrf.mxu1 }
 0x21d   :  { %v2220_v31 = vadd.f32 %v5668_v9, %v2149_v47  ;;  %v1632_v10 = vadd.f32 %v1518_v56, %v6644_v27  ;;  %v1633_v3 = vadd.f32 %v1517_v8, %v6645_v42  ;;  %v2033_v44 = vsel %vm2026_vm3, %v2018_v2, %v2019_v11 }
 0x21e   :  { %v2346_v13 = vadd.s32 456, %v4324_v50  ;;  %v2409_v46 = vand.u32 31, %v2345_v59  ;;  %v2706_v20 = vpack.c.bf16 %v6153_v12, %v6153_v12  ;;  %v2541_v43 = vsel %vm2477_vm9, %v2281_v62, 0.0 }
 0x21f   :  { %v2032_v4 = vsel %vm2026_vm3, %v2019_v11, %v2020_v29  ;;  %v2147_v7 = vadd.f32 %v2033_v44, %v1632_v10  ;;  %v2669_v0 = vmax.f32 %v2668_v57, %v2541_v43  ;;  %vm6170_vm10 = vcmp.lt.s32.totalorder %v2411_v53, %v5654_v48 }
 0x220   :  { %v2148_v2 = vadd.f32 %v2032_v4, %v1633_v3  ;;  %v2410_v23 = vand.u32 31, %v2346_v13  ;;  %v2761_v49 = vunpack.c.l.b16 %v2706_v20  ;;  %v2284_v61 = vmax.f32 %v2220_v31, 0.0  ;;  %v6650_v31 = vld [vmem:[#allocation46_spill] sm:$0xff]  ;;  %v1435_v20 = vpop.f32.mrf.mxu0  ;;  %v6654_v4 = vld [vmem:[#allocation51_spill] sm:$0xff] }
 0x221   :  { %v2218_v51 = vadd.f32 %v5668_v9, %v2147_v7  ;;  %vm2478_vm11 = vcmp.lt.s32.totalorder %v2409_v46, %v5654_v48  ;;  %v2670_v36 = vrot.slane %v2669_v0, 4  ;;  %v1509_v34 = vrot.slane %v6138_v60, 2 }
 0x222   :  { %v2219_v33 = vadd.f32 %v5668_v9, %v2148_v2  ;;  %vm6178_vm12 = vcmp.lt.s32.totalorder %v2410_v23, %v5654_v48  ;;  %v6185_v57 = vsel %vm2771_vm8, %v2761_v49, %v6111_v45  ;;  %v1507_v52 = vrot.slane %v6157_v1, 2  ;;  %v1950_v2 = vpop.f32.mrf.mxu1 }
 0x223   :  { %v2282_v5 = vmax.f32 %v2218_v51, 0.0  ;;  %v2022_v11 = vrot.slane %v6163_v39, 3  ;;  %v2671_v54 = vmax.f32 %v2669_v0, %v2670_v36  ;;  %v2348_v47 = vadd.s32 472, %v4324_v50  ;;  %v6653_v39 = vld [vmem:[#allocation50_spill] sm:$0xff]  ;;  %v6655_v51 = vld [vmem:[#allocation61_spill] sm:$0xff] }
 0x224   :  { %v2283_v17 = vmax.f32 %v2219_v33, 0.0  ;;  %v1510_v59 = vrot.slane %v3674_v40, 2  ;;  %v2024_v8 = vrot.slane %v6144_v19, 3  ;;  %v1515_v60 = vsel %vm1511_vm2, %v1506_v37, %v1507_v52  ;;  %v6651_v19 = vld [vmem:[#allocation58_spill] sm:$0xff] }
 0x225   :  { %v2542_v53 = vsel %vm2478_vm11, %v2282_v5, 0.0  ;;  %v2025_v45 = vrot.slane %v3746_v21, 3  ;;  %v2672_v56 = vrot.slane %v2671_v54, 2  ;;  %v1635_v27 = vadd.f32 %v1515_v60, %v6650_v31 }
 0x226   :  { %v2543_v62 = vsel %vm6178_vm12, %v2283_v17, 0.0  ;;  %v2030_v10 = vsel %vm2026_vm3, %v2021_v24, %v2022_v11  ;;  %v2412_v42 = vand.u32 31, %v2348_v47  ;;  %v1512_v41 = vsel %vm1511_vm2, %v1509_v34, %v1510_v59 }
 0x227   :  { %v2676_v1 = vmax.f32 %v2542_v53, %v2543_v62  ;;  %v6652_v3 = vrot.slane %v6651_v19, 2  ;;  %v2673_v44 = vmax.f32 %v2671_v54, %v2672_v56  ;;  %v2544_v13 = vsel %vm6170_vm10, %v2284_v61, 0.0 }
 0x228   :  { %v2150_v46 = vadd.f32 %v2030_v10, %v1635_v27  ;;  %v1638_v22 = vadd.f32 %v1512_v41, %v6653_v39  ;;  %v2620_v24 = vrot.slane %v6062_v28, 1  ;;  %v2027_v0 = vsel %vm2026_vm3, %v2024_v8, %v2025_v45  ;;  %v6657_v27 = vld [vmem:[#allocation56_spill] sm:$0xff] }
 0x229   :  { %v1575_v37 = vsel %vm1511_vm2, %v1510_v59, %v6652_v3  ;;  %v2677_v43 = vmax.f32 %v2676_v1, %v2544_v13  ;;  %v2674_v23 = vrot.slane %v2673_v44, 1  ;;  %v6656_v40 = vrot.slane %v6655_v51, 3 }
 0x22a   :  { %v1639_v7 = vadd.f32 %v1575_v37, %v6654_v4  ;;  %v2221_v49 = vadd.f32 %v5668_v9, %v2150_v46  ;;  %v2153_v61 = vadd.f32 %v2027_v0, %v1638_v22  ;;  %vm2481_vm13 = vcmp.lt.s32.totalorder %v2412_v42, %v5654_v48 }
 0x22b   :  { %v2090_v15 = vsel %vm2026_vm3, %v2025_v45, %v6656_v40  ;;  %v2351_v33 = vadd.s32 496, %v4324_v50  ;;  %v1508_v29 = vrot.slane %v1435_v20, 2  ;;  %v6222_v21 = vmax.f32 %v2673_v44, %v2674_v23 }
 0x22c   :  { %v2154_v36 = vadd.f32 %v2090_v15, %v1639_v7  ;;  %v2285_v5 = vmax.f32 %v2221_v49, 0.0  ;;  %v2352_v54 = vadd.s32 504, %v4324_v50  ;;  %v2023_v17 = vrot.slane %v1950_v2, 3 }
 0x22d   :  { %v6228_v47 = vmax.f32 %v5702_v55, %v2602_v25  ;;  %v2224_v59 = vadd.f32 %v5668_v9, %v2153_v61  ;;  %v1513_v53 = vsel %vm1511_vm2, %v1508_v29, %v1509_v34  ;;  %v1514_v60 = vsel %vm1511_vm2, %v1507_v52, %v1508_v29  ;;  %v6658_v34 = vld [vmem:[#allocation57_spill] sm:$0xff] }
 0x22e   :  { %v6238_v45 = vmax.f32 %v5708_v14, %v2611_v32  ;;  %v6241_v56 = vmax.f32 %v6062_v28, %v2620_v24  ;;  %v2707_v55 = vpack.c.bf16 %v6222_v21, %v6222_v21  ;;  %v2545_v25 = vsel %vm2481_vm13, %v2285_v5, 0.0 }
 0x22f   :  { %v2678_v62 = vmax.f32 %v2677_v43, %v2545_v25  ;;  %v2415_v31 = vand.u32 31, %v2351_v33  ;;  %v1636_v10 = vadd.f32 %v1514_v60, %v6657_v27  ;;  %v1637_v1 = vadd.f32 %v1513_v53, %v6658_v34 }
 0x230   :  { %v2225_v52 = vadd.f32 %v5668_v9, %v2154_v36  ;;  %v2416_v42 = vand.u32 31, %v2352_v54  ;;  %v2028_v14 = vsel %vm2026_vm3, %v2023_v17, %v2024_v8  ;;  %v2029_v32 = vsel %vm2026_vm3, %v2022_v11, %v2023_v17  ;;  %v3277_v8 = vld [vmem:[%s6353_s5] ss:$0 sm:$0xff] }
 0x231   :  { %v2679_v28 = vrot.slane %v2678_v62, 4  ;;  %v2288_v41 = vmax.f32 %v2224_v59, 0.0  ;;  %v2151_v19 = vadd.f32 %v2029_v32, %v1636_v10  ;;  %v2152_v3 = vadd.f32 %v2028_v14, %v1637_v1 }
 0x232   :  { %v2762_v37 = vunpack.c.l.b16 %v2707_v55  ;;  %v2349_v44 = vadd.s32 480, %v4324_v50  ;;  %v2350_v13 = vadd.s32 488, %v4324_v50  ;;  %vm2484_vm2 = vcmp.lt.s32.totalorder %v2415_v31, %v5654_v48 }
 0x233   :  { %v2680_v46 = vmax.f32 %v2678_v62, %v2679_v28  ;;  %v2222_v39 = vadd.f32 %v5668_v9, %v2151_v19  ;;  %v2223_v22 = vadd.f32 %v5668_v9, %v2152_v3  ;;  %vm3872_vm14 = vmmov 0  }
 0x234   :  { %3763 = vmatprep.mubr.msk.bf16.mxu0 %vm3872_vm14, %v6406_v38  ;;  %v2289_v11 = vmax.f32 %v2225_v52, 0.0  ;;  %vm6259_vm3 = vcmp.lt.s32.totalorder %v2416_v42, %v5654_v48  ;;  %v2413_v20 = vand.u32 31, %v2349_v44  ;;  %v2414_v24 = vand.u32 31, %v2350_v13  ;;  %3783 = vmatprep.mubr.msk.bf16.mxu1 %vm3872_vm14, %v6406_v38 }
 0x235   :  { %v2681_v50 = vrot.slane %v2680_v46, 2  ;;  %v2286_v43 = vmax.f32 %v2222_v39, 0.0  ;;  %v2287_v4 = vmax.f32 %v2223_v22, 0.0  ;;  %vm2773_vm15 = vcmask 1045509   ;;  %v3851_v22 = vld [vmem:[%s6352_s6 + $0x8] sm:$0xff]  }
 0x236   :  { %v2548_v7 = vsel %vm2484_vm2, %v2288_v41, 0.0  ;;  %vm2482_vm4 = vcmp.lt.s32.totalorder %v2413_v20, %v5654_v48  ;;  %vm2483_vm5 = vcmp.lt.s32.totalorder %v2414_v24, %v5654_v48  ;;  %v2783_v9 = vsel %vm2773_vm15, %v2762_v37, %v6185_v57 }
 0x237   :  { %v2682_v0 = vmax.f32 %v2680_v46, %v2681_v50  ;;  %v2546_v2 = vsel %vm2482_vm4, %v2286_v43, 0.0  ;;  %v2547_v23 = vsel %vm2483_vm5, %v2287_v4, 0.0  ;;  %v2912_v49 = vsel %vm2767_vm0, %v5532_v30, %v5161_v63 }
 0x238   :  { %v2685_v51 = vmax.f32 %v2546_v2, %v2547_v23  ;;  %vm2775_vm6 = vcmask 1046534   ;;  %v2913_v40 = vsel %vm2769_vm1, %v5688_v58, %v2912_v49  ;;  %v2919_v15 = vsel %vm2767_vm0, %v5997_v35, %v5950_v16 }
 0x239   :  { %v2683_v48 = vrot.slane %v2682_v0, 1  ;;  %vm2777_vm7 = vcmask 1047559   ;;  %v2914_v57 = vsel %vm2771_vm8, %v5752_v18, %v2913_v40  ;;  %v2920_v61 = vsel %vm2769_vm1, %v6077_v6, %v2919_v15 }
 0x23a   :  { %v2686_v36 = vmax.f32 %v2685_v51, %v2548_v7  ;;  %v2915_v63 = vsel %vm2773_vm15, %v6228_v47, %v2914_v57  ;;  %v2921_v33 = vsel %vm2771_vm8, %v6153_v12, %v2920_v61  ;;  %v2549_v5 = vsel %vm6259_vm3, %v2289_v11, 0.0  ;;  %v3852_v11 = vld [vmem:[%s6352_s6] sm:$0xff]  }
 0x23b   :  { %v2684_v29 = vmax.f32 %v2682_v0, %v2683_v48  ;;  %v2916_v16 = vsel %vm2775_vm6, %v6238_v45, %v2915_v63  ;;  %v2922_v35 = vsel %vm2773_vm15, %v6222_v21, %v2921_v33  ;;  %v2696_v55 = vpack.c.bf16 %v5532_v30, %v5532_v30 }
 0x23c   :  { %v2687_v54 = vmax.f32 %v2686_v36, %v2549_v5  ;;  %v6292_v6 = vsel %vm2777_vm7, %v6241_v56, %v2916_v16  ;;  %v2697_v62 = vpack.c.bf16 %v5688_v58, %v5688_v58  ;;  %v2698_v31 = vpack.c.bf16 %v5752_v18, %v5752_v18 }
 0x23d   :  { %v2708_v17 = vpack.c.bf16 %v2684_v29, %v2684_v29  ;;  %v2923_v59 = vsel %vm2775_vm6, %v2684_v29, %v2922_v35  ;;  %v2699_v27 = vpack.c.bf16 %v6228_v47, %v6228_v47  ;;  %v2751_v34 = vunpack.c.l.b16 %v2696_v55 }
 0x23e   :  { %v2688_v53 = vrot.slane %v2687_v54, 4  ;;  %v2700_v1 = vpack.c.bf16 %v6238_v45, %v6238_v45  ;;  %v2752_v52 = vunpack.c.l.b16 %v2697_v62  ;;  %v2701_v30 = vpack.c.bf16 %v6241_v56, %v6241_v56 }
 0x23f   :  { %v2763_v12 = vunpack.c.l.b16 %v2708_v17  ;;  %v2753_v14 = vunpack.c.l.b16 %v2698_v31  ;;  %v2754_v32 = vunpack.c.l.b16 %v2699_v27  ;;  %v2768_v28 = vsel %vm2767_vm0, %v2751_v34, %v5192_v26  ;;  %v3850_v26 = vld [vmem:[%s6352_s6 + $0x10] sm:$0xff]  }
 0x240   :  { %v2689_v60 = vmax.f32 %v2687_v54, %v2688_v53  ;;  %v2755_v18 = vunpack.c.l.b16 %v2700_v1  ;;  %v2770_v41 = vsel %vm2769_vm1, %v2752_v52, %v2768_v28  ;;  %v2756_v47 = vunpack.c.l.b16 %v2701_v30  ;;  %3778 = vmatpush3.bf16.msra.mxu1 %v3850_v26  ;;  %v3288_v54 = vld [vmem:[%s6354_s7] ss:$0 sm:$0xff] }
 0x241   :  { %v2784_v25 = vsel %vm2775_vm6, %v2763_v12, %v2783_v9  ;;  %v2772_v45 = vsel %vm2771_vm8, %v2753_v14, %v2770_v41  ;;  %3779 = vmatprep.subr.bf16.mxu1 %v6406_v38  ;;  %vm3044_vm0 = vcmask 15360  }
 0x242   :  { %v2690_v21 = vrot.slane %v2689_v60, 2  ;;  %v2774_v44 = vsel %vm2773_vm15, %v2754_v32, %v2772_v45 }
 0x243   :  { %v2776_v56 = vsel %vm2775_vm6, %v2755_v18, %v2774_v44 }
 0x244   :  { %v2691_v10 = vmax.f32 %v2689_v60, %v2690_v21  ;;  %v2778_v13 = vsel %vm2777_vm7, %v2756_v47, %v2776_v56  ;;  %3780 = vmatpush3.bf16.msra.mxu1 %v3851_v22 }
 0x245   :  { %3781 = vmatprep.subr.bf16.mxu1 %v6406_v38 }
 0x246   :  { %v2692_v42 = vrot.slane %v2691_v10, 1 }
 0x248   :  { %v2693_v58 = vmax.f32 %v2691_v10, %v2692_v42  ;;  %3782 = vmatpush3.bf16.msra.mxu1 %v3852_v11 }
 0x24a   :  { %v2709_v19 = vpack.c.bf16 %v2693_v58, %v2693_v58  ;;  %v2924_v3 = vsel %vm2777_vm7, %v2693_v58, %v2923_v59 }
 0x24c   :  { %v2764_v37 = vunpack.c.l.b16 %v2709_v19 }
 0x24e   :  { %v2785_v46 = vsel %vm2777_vm7, %v2764_v37, %v2784_v25 }
 0x24f   :  { %v2786_v39 = vpack.c.b16 %v2785_v46, %v2778_v13 }
 0x251   :  { %3764 = vmatmul.mubr.bf16.vlgmr.msra.gmra.mxu0 %v2786_v39 }
 0x311   :  { %v2870_v20 = vpop.f32.mrf.mxu0 }
 0x312   :  { %v2871_v24 = vadd.f32 %v3277_v8, %v2870_v20 }
 0x313   :  { %v3765_v50 = vpop.f32.mrf.mxu0 }
 0x314   :  { %v3286_v43 = vmul.f32 -1.442695, %v2871_v24  ;;  %v2889_v48 = vmax.f32 %v2871_v24, 0.0 }
 0x315   :  { %v2873_v4 = vpop.f32.mrf.mxu0 }
 0x316   :  { %3853 = vpow2.f32 %v3286_v43  ;;  %v2874_v7 = vadd.f32 %v3277_v8, %v2873_v4 }
 0x317   :  { %v3766_v9 = vpop.f32.mrf.mxu0 }
 0x318   :  { %v3287_v0 = vmul.f32 -1.442695, %v2874_v7  ;;  %v2890_v61 = vmax.f32 %v2874_v7, 0.0 }
 0x31a   :  { %3855 = vpow2.f32 %v3287_v0 }
 0x323   :  { %v3854_v2 = vpop.eup %3853 }
 0x324   :  { %v2883_v23 = vadd.f32 1.0, %v3854_v2 }
 0x326   :  { %3857 = vrcp.f32 %v2883_v23 }
 0x327   :  { %v3856_v49 = vpop.eup %3855 }
 0x328   :  { %v2884_v38 = vadd.f32 1.0, %v3856_v49 }
 0x32a   :  { %3859 = vrcp.f32 %v2884_v38 }
 0x333   :  { %v3858_v51 = vpop.eup %3857 }
 0x334   :  { %v2893_v40 = vsub.f32 1.0, %v3858_v51  ;;  %v2891_v63 = vmul.f32 %v3858_v51, %v2889_v48 }
 0x336   :  { %v2927_v57 = vmul.f32 %v6292_v6, %v2893_v40 }
 0x337   :  { %v3860_v15 = vpop.eup %3859 }
 0x338   :  { %v2894_v36 = vsub.f32 1.0, %v3860_v15  ;;  %v2892_v33 = vmul.f32 %v3860_v15, %v2890_v61  ;;  %v2929_v5 = vadd.f32 %v2927_v57, %v2891_v63 }
 0x33a   :  { %v2928_v29 = vmul.f32 %v2924_v3, %v2894_v36 }
 0x33c   :  { %v2930_v16 = vadd.f32 %v2928_v29, %v2892_v33 }
 0x33e   :  { %v2931_v35 = vpack.c.bf16 %v2930_v16, %v2929_v5 }
 0x340   :  { %3784 = vmatmul.mubr.bf16.vlgmr.msra.gmra.mxu1 %v2931_v35 }
 0x400   :  { %v3037_v17 = vpop.f32.mrf.mxu1 }
 0x401   :  { %v3038_v59 = vadd.f32 %v3288_v54, %v3037_v17 }
 0x402   :  { %v3785_v53 = vpop.f32.mrf.mxu1 }
 0x403   :  { %v3045_v12 = vsel %vm3044_vm0, %v3038_v59, -inf }
 0x404   :  { %3046 = vmax.xlane.f32.xlu0 %v3045_v12  ;;  %v3040_v6 = vpop.f32.mrf.mxu1 }
 0x405   :  { %v3041_v60 = vadd.f32 %v3288_v54, %v3040_v6 }
 0x406   :  { %v3786_v55 = vpop.f32.mrf.mxu1 }
 0x407   :  { %v3048_v25 = vsel %vm3044_vm0, %v3041_v60, -inf }
 0x408   :  { %3049 = vmax.xlane.f32.xlu0 %v3048_v25 }
 0x48d   :  { %v3047_v62 = vpop.xlane.xlu0 %3046 }
 0x48e   :  { %v3051_v21 = vsub.f32 %v3038_v59, %v3047_v62 }
 0x490   :  { %v3053_v31 = vmul.f32 1.442695, %v3051_v21 }
 0x491   :  { %v3050_v27 = vpop.xlane.xlu0 %3049 }
 0x492   :  { %3861 = vpow2.f32 %v3053_v31  ;;  %v3052_v10 = vsub.f32 %v3041_v60, %v3050_v27 }
 0x494   :  { %v3055_v34 = vmul.f32 1.442695, %v3052_v10 }
 0x496   :  { %3863 = vpow2.f32 %v3055_v34 }
 0x49f   :  { %v3862_v1 = vpop.eup %3861 }
 0x4a0   :  { %v3057_v52 = vsel %vm3044_vm0, %v3862_v1, 0.0 }
 0x4a1   :  { %3058 = vadd.xlane.f32.xlu1 %v3057_v52 }
 0x4a3   :  { %v3864_v30 = vpop.eup %3863 }
 0x4a4   :  { %v3060_v42 = vsel %vm3044_vm0, %v3864_v30, 0.0 }
 0x4a5   :  { %3061 = vadd.xlane.f32.xlu1 %v3060_v42 }
 0x52a   :  { %v3059_v14 = vpop.xlane.xlu1 %3058 }
 0x52b   :  { %3865 = vlog2.f32 %v3059_v14 }
 0x52e   :  { %v3062_v32 = vpop.xlane.xlu1 %3061 }
 0x52f   :  { %3867 = vlog2.f32 %v3062_v32 }
 0x538   :  { %v3866_v58 = vpop.eup %3865 }
 0x539   :  { %v3064_v28 = vmul.f32 0.6931472, %v3866_v58 }
 0x53b   :  { %v3067_v18 = vsub.f32 %v3051_v21, %v3064_v28 }
 0x53c   :  { %v3868_v41 = vpop.eup %3867 }
 0x53d   :  { %3069 = vst.msk [vmem:[%s6355_s8] sm:$0xff] %vm3044_vm0, %v3067_v18  ;;  %v3066_v47 = vmul.f32 0.6931472, %v3868_v41 }
 0x53f   :  { %v3068_v19 = vsub.f32 %v3052_v10, %v3066_v47 }
 0x541   :  { %3070 = vst.msk [vmem:[%s6355_s8 + $0x8] sm:$0xff] %vm3044_vm0, %v3068_v19 }

</bundles_post_ra>
